<compile_context>
chip_gen: v7x
topology: tpu7x:2x2x1
jax: 0.10.0
libtpu: 0.0.40
codegen_flags: <defaults>
</compile_context>

<pallas_src>
import jax
import jax.numpy as jnp
from jax.experimental import pallas as pl
from jax.experimental.pallas import tpu as pltpu

EPS = 1e-5  # nn.LayerNorm default eps


def _round_up(x, m):
    return -(-x // m) * m


def _layernorm(x, gamma, beta, n_valid):
    """Single-pass LayerNorm over the last axis.

    `n_valid` is the number of *real* features; trailing lanes beyond n_valid
    (if any) are guaranteed zero by construction, so plain sums are exact.
    Variance is clamped at 0 to avoid E[x^2]-E[x]^2 cancellation going negative.
    """
    inv_n = 1.0 / float(n_valid)
    mu = jnp.sum(x, axis=-1, keepdims=True) * inv_n
    ms = jnp.sum(x * x, axis=-1, keepdims=True) * inv_n
    var = jnp.maximum(ms - mu * mu, 0.0)
    return (x - mu) * jax.lax.rsqrt(var + EPS) * gamma + beta


def _mlp_base(obs, fng, fnb, w1, b1, g1, bt1, w2, b2, g2, bt2,
              obs_dim, h_valid, cdt):
    x = _layernorm(obs, fng, fnb, obs_dim)
    x = jnp.dot(x.astype(cdt), w1, preferred_element_type=jnp.float32) + b1
    x = jnp.maximum(x, 0.0)
    x = _layernorm(x, g1, bt1, h_valid)
    x = jnp.dot(x.astype(cdt), w2, preferred_element_type=jnp.float32) + b2
    x = jnp.maximum(x, 0.0)
    x = _layernorm(x, g2, bt2, h_valid)
    return x


def _make_pergate_kernel(obs_dim, h_valid, cdt):
    """GRU as per-gate matmuls (used when H is not a multiple of 128).

    Hidden dims are zero-padded to Hp = round_up(H, 128) so every activation /
    store is lane-dense; padded lanes stay exactly 0 through the whole chain.
    """
    def kernel(obs_ref, h_ref, mask_ref,
               fng_ref, fnb_ref,
               w1_ref, b1_ref, g1_ref, bt1_ref,
               w2_ref, b2_ref, g2_ref, bt2_ref,
               wir_ref, whr_ref, br_ref,
               wiz_ref, whz_ref, bz_ref,
               win_ref, bin_ref, whn_ref, bhn_ref,
               gr_ref, brn_ref, wv_ref, bv_ref,
               val_ref, hout_ref):
        x = _mlp_base(obs_ref[...],
                      fng_ref[...], fnb_ref[...],
                      w1_ref[...], b1_ref[...], g1_ref[...], bt1_ref[...],
                      w2_ref[...], b2_ref[...], g2_ref[...], bt2_ref[...],
                      obs_dim, h_valid, cdt)

        # RNNLayer: masked hidden state + single-step GRU cell.
        h = h_ref[...] * mask_ref[...]          # [TB,1] broadcast over [TB,Hp]
        xc = x.astype(cdt)
        hc = h.astype(cdt)
        # No concatenate([x,h]): split-K matmuls avoid materializing [TB,2H].
        r = jax.nn.sigmoid(
            jnp.dot(xc, wir_ref[...], preferred_element_type=jnp.float32)
            + jnp.dot(hc, whr_ref[...], preferred_element_type=jnp.float32)
            + br_ref[...])
        z = jax.nn.sigmoid(
            jnp.dot(xc, wiz_ref[...], preferred_element_type=jnp.float32)
            + jnp.dot(hc, whz_ref[...], preferred_element_type=jnp.float32)
            + bz_ref[...])
        gi_n = jnp.dot(xc, win_ref[...], preferred_element_type=jnp.float32) + bin_ref[...]
        gh_n = jnp.dot(hc, whn_ref[...], preferred_element_type=jnp.float32) + bhn_ref[...]
        n = jnp.tanh(gi_n + r * gh_n)
        h_new = (1.0 - z) * n + z * h
        hout_ref[...] = h_new

        feat = _layernorm(h_new, gr_ref[...], brn_ref[...], h_valid)
        # N=1 value head as VPU multiply + lane reduction (no 1-lane MXU pop).
        val_ref[...] = jnp.sum(feat * wv_ref[...], axis=-1, keepdims=True) + bv_ref[...]
    return kernel


def _make_fused_kernel(obs_dim, H, cdt):
    """GRU as two fused GEMMs (used when H % 128 == 0 -> lane-aligned slices)."""
    def kernel(obs_ref, h_ref, mask_ref,
               fng_ref, fnb_ref,
               w1_ref, b1_ref, g1_ref, bt1_ref,
               w2_ref, b2_ref, g2_ref, bt2_ref,
               wih_ref, bih_ref, whh_ref, bhh_ref,
               gr_ref, brn_ref, wv_ref, bv_ref,
               val_ref, hout_ref):
        x = _mlp_base(obs_ref[...],
                      fng_ref[...], fnb_ref[...],
                      w1_ref[...], b1_ref[...], g1_ref[...], bt1_ref[...],
                      w2_ref[...], b2_ref[...], g2_ref[...], bt2_ref[...],
                      obs_dim, H, cdt)

        h = h_ref[...] * mask_ref[...]
        gi = jnp.dot(x.astype(cdt), wih_ref[...],
                     preferred_element_type=jnp.float32) + bih_ref[...]
        gh = jnp.dot(h.astype(cdt), whh_ref[...],
                     preferred_element_type=jnp.float32) + bhh_ref[...]
        r = jax.nn.sigmoid(gi[:, 0:H] + gh[:, 0:H])
        z = jax.nn.sigmoid(gi[:, H:2 * H] + gh[:, H:2 * H])
        n = jnp.tanh(gi[:, 2 * H:] + r * gh[:, 2 * H:])
        h_new = (1.0 - z) * n + z * h
        hout_ref[...] = h_new

        feat = _layernorm(h_new, gr_ref[...], brn_ref[...], H)
        val_ref[...] = jnp.sum(feat * wv_ref[...], axis=-1, keepdims=True) + bv_ref[...]
    return kernel


def prepare_params(raw, compute_dtype=jnp.bfloat16):
    """One-time preparation of kernel-ready weights (hoisted out of forward).

    Slices the GRU packed weights into gates, zero-pads all hidden-sized
    tensors to Hp = round_up(H, 128) when H % 128 != 0 (lane-dense path), and
    casts matmul weights to `compute_dtype`.  Biases / LayerNorm params stay
    f32 (they add into f32 accumulators).
    """
    OBS, H = raw["w1"].shape
    fused = (H % 128 == 0)
    Hp = H if fused else _round_up(H, 128)
    cdt = compute_dtype
    f32 = jnp.float32

    def padc(a, cols):                       # zero-pad columns (last dim)
        return jnp.pad(a, ((0, 0), (0, cols - a.shape[1])))

    def padrc(a, rows, cols):                # zero-pad rows and columns
        return jnp.pad(a, ((0, rows - a.shape[0]), (0, cols - a.shape[1])))

    head = (
        raw["fn_g"].astype(f32), raw["fn_b"].astype(f32),
        padc(raw["w1"], Hp).astype(cdt), padc(raw["b1"], Hp).astype(f32),
        padc(raw["ln1_g"], Hp).astype(f32), padc(raw["ln1_b"], Hp).astype(f32),
        padrc(raw["w2"], Hp, Hp).astype(cdt), padc(raw["b2"], Hp).astype(f32),
        padc(raw["ln2_g"], Hp).astype(f32), padc(raw["ln2_b"], Hp).astype(f32),
    )
    tail = (
        padc(raw["lnr_g"], Hp).astype(f32), padc(raw["lnr_b"], Hp).astype(f32),
        padc(raw["w_v"], Hp).astype(f32), raw["b_v"].astype(f32),
    )

    w_ih, w_hh = raw["w_ih"], raw["w_hh"]    # [H, 3H], columns (r, z, n)
    b_ih, b_hh = raw["b_ih"], raw["b_hh"]    # [1, 3H]
    if fused:
        gru = (w_ih.astype(cdt), b_ih.astype(f32),
               w_hh.astype(cdt), b_hh.astype(f32))
    else:
        gru = (
            padrc(w_ih[:, 0:H], Hp, Hp).astype(cdt),          # W_ir
            padrc(w_hh[:, 0:H], Hp, Hp).astype(cdt),          # W_hr
            padc(b_ih[:, 0:H] + b_hh[:, 0:H], Hp).astype(f32),  # b_r
            padrc(w_ih[:, H:2 * H], Hp, Hp).astype(cdt),      # W_iz
            padrc(w_hh[:, H:2 * H], Hp, Hp).astype(cdt),      # W_hz
            padc(b_ih[:, H:2 * H] + b_hh[:, H:2 * H], Hp).astype(f32),  # b_z
            padrc(w_ih[:, 2 * H:], Hp, Hp).astype(cdt),       # W_in
            padc(b_ih[:, 2 * H:], Hp).astype(f32),            # b_in
            padrc(w_hh[:, 2 * H:], Hp, Hp).astype(cdt),       # W_hn
            padc(b_hh[:, 2 * H:], Hp).astype(f32),            # b_hn
        )

    return {
        "weights": head + gru + tail,
        "H": H, "Hp": Hp, "obs_dim": OBS, "fused": fused,
        "compute_dtype": cdt,
    }


def _pick_block_rows(B, obs_dim, Hp, block_b, weight_bytes, vmem_budget):
    """Batch tile size: multiple of 8, >=2 tiles for B>16 (v7x megacore),
    capped by block_b and a rough VMEM budget."""
    if B <= 16:
        return B                                  # one full-array block
    avail = max(vmem_budget - 2 * weight_bytes, 4 << 20)
    # streamed tiles (x2 double-buffer) + ~8 Hp-wide f32 activation temps/row
    per_row = 4 * (2 * (obs_dim + Hp + 1) + 2 * (Hp + 1) + 8 * Hp)
    cap = max(8, (avail // per_row) // 8 * 8)
    two_tiles = _round_up(-(-B // 2), 8)          # >=2 grid steps for v7x
    tb = min(block_b, cap, two_tiles)
    return max(8, (tb // 8) * 8)


def r_critic_forward(cent_obs, rnn_states, masks, prep, *, block_b=512,
                     vmem_limit_bytes=48 * 1024 * 1024):
    """R_Critic.forward: returns (values [B,1], new rnn_states [B,1,H])."""
    cent_obs = cent_obs.astype(jnp.float32)
    masks = masks.astype(jnp.float32)
    B, OBS = cent_obs.shape
    H, Hp, fused = prep["H"], prep["Hp"], prep["fused"]
    cdt = prep["compute_dtype"]
    assert OBS == prep["obs_dim"]

    h_in = rnn_states.reshape(B, H).astype(jnp.float32)   # recurrent_N = 1
    if Hp != H:
        h_in = jnp.pad(h_in, ((0, 0), (0, Hp - H)))        # small [B,H] copy only

    weights = prep["weights"]
    weight_bytes = sum(int(w.size) * w.dtype.itemsize for w in weights)
    tb = _pick_block_rows(B, OBS, Hp, block_b, weight_bytes, vmem_limit_bytes)
    grid = (pl.cdiv(B, tb),)   # ragged last block handled by Pallas, no padding

    kernel = (_make_fused_kernel(OBS, H, cdt) if fused
              else _make_pergate_kernel(OBS, H, cdt))

    def batch_spec(cols):
        return pl.BlockSpec((tb, cols), lambda i: (i, 0))

    def resident(a):
        # Same block index every grid step -> stays resident in VMEM.
        return pl.BlockSpec(a.shape, lambda i: (0, 0))

    values, h_out = pl.pallas_call(
        kernel,
        out_shape=(jax.ShapeDtypeStruct((B, 1), jnp.float32),
                   jax.ShapeDtypeStruct((B, Hp), jnp.float32)),
        grid=grid,
        in_specs=[batch_spec(OBS), batch_spec(Hp), batch_spec(1)]
                 + [resident(w) for w in weights],
        out_specs=(pl.BlockSpec((tb, 1), lambda i: (i, 0)),
                   pl.BlockSpec((tb, Hp), lambda i: (i, 0))),
        compiler_params=pltpu.CompilerParams(
            dimension_semantics=("parallel",),
            vmem_limit_bytes=vmem_limit_bytes),
    )(cent_obs, h_in, masks, *weights)

    if Hp != H:
        h_out = h_out[:, :H]
    return values, h_out.reshape(B, 1, H)


# ----------------------------------------------------------------------------
# Parameter construction + pure-JAX reference (mirrors the PyTorch forward)
# ----------------------------------------------------------------------------
def make_params(key, obs_dim, hidden):
    ks = jax.random.split(key, 6)
    f32 = jnp.float32

    def w(k, i, o):  # weights stored pre-transposed: [in, out]
        return (0.1 * jax.random.normal(k, (i, o))).astype(f32)

    return {
        "fn_g": jnp.ones((1, obs_dim), f32), "fn_b": jnp.zeros((1, obs_dim), f32),
        "w1": w(ks[0], obs_dim, hidden), "b1": jnp.zeros((1, hidden), f32),
        "ln1_g": jnp.ones((1, hidden), f32), "ln1_b": jnp.zeros((1, hidden), f32),
        "w2": w(ks[1], hidden, hidden), "b2": jnp.zeros((1, hidden), f32),
        "ln2_g": jnp.ones((1, hidden), f32), "ln2_b": jnp.zeros((1, hidden), f32),
        "w_ih": w(ks[2], hidden, 3 * hidden), "b_ih": jnp.zeros((1, 3 * hidden), f32),
        "w_hh": w(ks[3], hidden, 3 * hidden), "b_hh": jnp.zeros((1, 3 * hidden), f32),
        "lnr_g": jnp.ones((1, hidden), f32), "lnr_b": jnp.zeros((1, hidden), f32),
        "w_v": w(ks[4], 1, hidden),           # stored as the [1, H] weight row
        "b_v": jnp.zeros((1, 1), f32),
    }


def reference_forward(cent_obs, rnn_states, masks, p):
    def ln(x, g, b):
        mu = jnp.mean(x, -1, keepdims=True)
        var = jnp.mean((x - mu) ** 2, -1, keepdims=True)
        return (x - mu) / jnp.sqrt(var + EPS) * g + b

    B, H = cent_obs.shape[0], p["w1"].shape[1]
    x = ln(cent_obs, p["fn_g"], p["fn_b"])
    x = ln(jnp.maximum(x @ p["w1"] + p["b1"], 0.0), p["ln1_g"], p["ln1_b"])
    x = ln(jnp.maximum(x @ p["w2"] + p["b2"], 0.0), p["ln2_g"], p["ln2_b"])
    h = rnn_states.reshape(B, H) * masks
    gi = x @ p["w_ih"] + p["b_ih"]
    gh = h @ p["w_hh"] + p["b_hh"]
    r = jax.nn.sigmoid(gi[:, :H] + gh[:, :H])
    z = jax.nn.sigmoid(gi[:, H:2 * H] + gh[:, H:2 * H])
    n = jnp.tanh(gi[:, 2 * H:] + r * gh[:, 2 * H:])
    h_new = (1 - z) * n + z * h
    feat = ln(h_new, p["lnr_g"], p["lnr_b"])
    return feat @ p["w_v"].T + p["b_v"], h_new.reshape(B, 1, H)


if __name__ == "__main__":
    def run_case(B, OBS, H, dtype, tol, block_b=512):
        key = jax.random.PRNGKey(0)
        k_obs, k_h, k_p = jax.random.split(key, 3)
        cent_obs = jax.random.normal(k_obs, (B, OBS), jnp.float32)
        rnn_states = jax.random.normal(k_h, (B, 1, H), jnp.float32)
        masks = jnp.ones((B, 1), jnp.float32).at[0, 0].set(0.0)  # one reset mask
        raw = make_params(k_p, OBS, H)
        prep = prepare_params(raw, compute_dtype=dtype)

        values, new_states = jax.block_until_ready(
            r_critic_forward(cent_obs, rnn_states, masks, prep, block_b=block_b))
        v_ref, h_ref = reference_forward(cent_obs, rnn_states, masks, raw)

        assert values.shape == (B, 1) and new_states.shape == (B, 1, H)
        assert jnp.allclose(values, v_ref, atol=tol, rtol=tol), (
            "values", dtype, float(jnp.max(jnp.abs(values - v_ref))))
        assert jnp.allclose(new_states, h_ref, atol=tol, rtol=tol), (
            "rnn_states", dtype, float(jnp.max(jnp.abs(new_states - h_ref))))

    # per-gate path (H padded to 128 lanes), exact f32 and bf16-MXU variants
    run_case(8, 24, 32, jnp.float32, 1e-3)
    run_case(8, 24, 32, jnp.bfloat16, 1e-1)
    # multi-tile batch pipeline with ragged last block (grid=3, tb=16)
    run_case(40, 24, 32, jnp.float32, 1e-3, block_b=16)
    # fused-GEMM GRU path (H % 128 == 0)
    run_case(16, 24, 128, jnp.float32, 1e-3)
    run_case(16, 24, 128, jnp.bfloat16, 1e-1)

    print("KERNEL_OK")
</pallas_src>

<mosaic_0001>
module attributes {stable_mosaic.version = 11 : i64} {
  func.func @kernel(%arg0: i32, %arg1: memref<8x24xf32, #tpu.memory_space<vmem>>, %arg2: memref<8x128xf32, #tpu.memory_space<vmem>>, %arg3: memref<8x1xf32, #tpu.memory_space<vmem>>, %arg4: memref<1x24xf32, #tpu.memory_space<vmem>>, %arg5: memref<1x24xf32, #tpu.memory_space<vmem>>, %arg6: memref<24x128xf32, #tpu.memory_space<vmem>>, %arg7: memref<1x128xf32, #tpu.memory_space<vmem>>, %arg8: memref<1x128xf32, #tpu.memory_space<vmem>>, %arg9: memref<1x128xf32, #tpu.memory_space<vmem>>, %arg10: memref<128x128xf32, #tpu.memory_space<vmem>>, %arg11: memref<1x128xf32, #tpu.memory_space<vmem>>, %arg12: memref<1x128xf32, #tpu.memory_space<vmem>>, %arg13: memref<1x128xf32, #tpu.memory_space<vmem>>, %arg14: memref<128x128xf32, #tpu.memory_space<vmem>>, %arg15: memref<128x128xf32, #tpu.memory_space<vmem>>, %arg16: memref<1x128xf32, #tpu.memory_space<vmem>>, %arg17: memref<128x128xf32, #tpu.memory_space<vmem>>, %arg18: memref<128x128xf32, #tpu.memory_space<vmem>>, %arg19: memref<1x128xf32, #tpu.memory_space<vmem>>, %arg20: memref<128x128xf32, #tpu.memory_space<vmem>>, %arg21: memref<1x128xf32, #tpu.memory_space<vmem>>, %arg22: memref<128x128xf32, #tpu.memory_space<vmem>>, %arg23: memref<1x128xf32, #tpu.memory_space<vmem>>, %arg24: memref<1x128xf32, #tpu.memory_space<vmem>>, %arg25: memref<1x128xf32, #tpu.memory_space<vmem>>, %arg26: memref<1x128xf32, #tpu.memory_space<vmem>>, %arg27: memref<1x1xf32, #tpu.memory_space<vmem>>, %arg28: memref<8x1xf32, #tpu.memory_space<vmem>>, %arg29: memref<8x128xf32, #tpu.memory_space<vmem>>) attributes {dimension_semantics = [#tpu.dimension_semantics<parallel>], iteration_bounds = array<i64: 1>, scalar_prefetch = 0 : i64, scratch_operands = 0 : i64, tpu.core_type = #tpu.core_type<tc>, window_params = [{transform_indices = @transform_0, window_bounds = array<i64: 8, 24>}, {transform_indices = @transform_1, window_bounds = array<i64: 8, 128>}, {transform_indices = @transform_2, window_bounds = array<i64: 8, 1>}, {pipeline_mode = #tpu.pipeline_mode<synchronous>, transform_indices = @transform_3, window_bounds = array<i64: 1, 24>}, {pipeline_mode = #tpu.pipeline_mode<synchronous>, transform_indices = @transform_4, window_bounds = array<i64: 1, 24>}, {pipeline_mode = #tpu.pipeline_mode<synchronous>, transform_indices = @transform_5, window_bounds = array<i64: 24, 128>}, {pipeline_mode = #tpu.pipeline_mode<synchronous>, transform_indices = @transform_6, window_bounds = array<i64: 1, 128>}, {pipeline_mode = #tpu.pipeline_mode<synchronous>, transform_indices = @transform_7, window_bounds = array<i64: 1, 128>}, {pipeline_mode = #tpu.pipeline_mode<synchronous>, transform_indices = @transform_8, window_bounds = array<i64: 1, 128>}, {pipeline_mode = #tpu.pipeline_mode<synchronous>, transform_indices = @transform_9, window_bounds = array<i64: 128, 128>}, {pipeline_mode = #tpu.pipeline_mode<synchronous>, transform_indices = @transform_10, window_bounds = array<i64: 1, 128>}, {pipeline_mode = #tpu.pipeline_mode<synchronous>, transform_indices = @transform_11, window_bounds = array<i64: 1, 128>}, {pipeline_mode = #tpu.pipeline_mode<synchronous>, transform_indices = @transform_12, window_bounds = array<i64: 1, 128>}, {pipeline_mode = #tpu.pipeline_mode<synchronous>, transform_indices = @transform_13, window_bounds = array<i64: 128, 128>}, {pipeline_mode = #tpu.pipeline_mode<synchronous>, transform_indices = @transform_14, window_bounds = array<i64: 128, 128>}, {pipeline_mode = #tpu.pipeline_mode<synchronous>, transform_indices = @transform_15, window_bounds = array<i64: 1, 128>}, {pipeline_mode = #tpu.pipeline_mode<synchronous>, transform_indices = @transform_16, window_bounds = array<i64: 128, 128>}, {pipeline_mode = #tpu.pipeline_mode<synchronous>, transform_indices = @transform_17, window_bounds = array<i64: 128, 128>}, {pipeline_mode = #tpu.pipeline_mode<synchronous>, transform_indices = @transform_18, window_bounds = array<i64: 1, 128>}, {pipeline_mode = #tpu.pipeline_mode<synchronous>, transform_indices = @transform_19, window_bounds = array<i64: 128, 128>}, {pipeline_mode = #tpu.pipeline_mode<synchronous>, transform_indices = @transform_20, window_bounds = array<i64: 1, 128>}, {pipeline_mode = #tpu.pipeline_mode<synchronous>, transform_indices = @transform_21, window_bounds = array<i64: 128, 128>}, {pipeline_mode = #tpu.pipeline_mode<synchronous>, transform_indices = @transform_22, window_bounds = array<i64: 1, 128>}, {pipeline_mode = #tpu.pipeline_mode<synchronous>, transform_indices = @transform_23, window_bounds = array<i64: 1, 128>}, {pipeline_mode = #tpu.pipeline_mode<synchronous>, transform_indices = @transform_24, window_bounds = array<i64: 1, 128>}, {pipeline_mode = #tpu.pipeline_mode<synchronous>, transform_indices = @transform_25, window_bounds = array<i64: 1, 128>}, {pipeline_mode = #tpu.pipeline_mode<synchronous>, transform_indices = @transform_26, window_bounds = array<i64: 1, 1>}, {transform_indices = @transform_27, window_bounds = array<i64: 8, 1>}, {transform_indices = @transform_28, window_bounds = array<i64: 8, 128>}]} {
    %c0 = arith.constant 0 : index
    %c0_0 = arith.constant 0 : index
    %0 = vector.load %arg1[%c0, %c0_0] : memref<8x24xf32, #tpu.memory_space<vmem>>, vector<8x24xf32>
    %c0_1 = arith.constant 0 : index
    %c0_2 = arith.constant 0 : index
    %1 = vector.load %arg4[%c0_1, %c0_2] : memref<1x24xf32, #tpu.memory_space<vmem>>, vector<1x24xf32>
    %c0_3 = arith.constant 0 : index
    %c0_4 = arith.constant 0 : index
    %2 = vector.load %arg5[%c0_3, %c0_4] : memref<1x24xf32, #tpu.memory_space<vmem>>, vector<1x24xf32>
    %c0_5 = arith.constant 0 : index
    %c0_6 = arith.constant 0 : index
    %3 = vector.load %arg6[%c0_5, %c0_6] : memref<24x128xf32, #tpu.memory_space<vmem>>, vector<24x128xf32>
    %c0_7 = arith.constant 0 : index
    %c0_8 = arith.constant 0 : index
    %4 = vector.load %arg7[%c0_7, %c0_8] : memref<1x128xf32, #tpu.memory_space<vmem>>, vector<1x128xf32>
    %c0_9 = arith.constant 0 : index
    %c0_10 = arith.constant 0 : index
    %5 = vector.load %arg8[%c0_9, %c0_10] : memref<1x128xf32, #tpu.memory_space<vmem>>, vector<1x128xf32>
    %c0_11 = arith.constant 0 : index
    %c0_12 = arith.constant 0 : index
    %6 = vector.load %arg9[%c0_11, %c0_12] : memref<1x128xf32, #tpu.memory_space<vmem>>, vector<1x128xf32>
    %c0_13 = arith.constant 0 : index
    %c0_14 = arith.constant 0 : index
    %7 = vector.load %arg10[%c0_13, %c0_14] : memref<128x128xf32, #tpu.memory_space<vmem>>, vector<128x128xf32>
    %c0_15 = arith.constant 0 : index
    %c0_16 = arith.constant 0 : index
    %8 = vector.load %arg11[%c0_15, %c0_16] : memref<1x128xf32, #tpu.memory_space<vmem>>, vector<1x128xf32>
    %c0_17 = arith.constant 0 : index
    %c0_18 = arith.constant 0 : index
    %9 = vector.load %arg12[%c0_17, %c0_18] : memref<1x128xf32, #tpu.memory_space<vmem>>, vector<1x128xf32>
    %c0_19 = arith.constant 0 : index
    %c0_20 = arith.constant 0 : index
    %10 = vector.load %arg13[%c0_19, %c0_20] : memref<1x128xf32, #tpu.memory_space<vmem>>, vector<1x128xf32>
    %cst = arith.constant dense<0.000000e+00> : vector<8xf32>
    %11 = vector.multi_reduction <add>, %0, %cst [1] : vector<8x24xf32> to vector<8xf32>
    %12 = vector.shape_cast %11 : vector<8xf32> to vector<8x1xf32>
    %cst_21 = arith.constant 0.0416666679 : f32
    %13 = vector.broadcast %cst_21 : f32 to vector<8x1xf32>
    %14 = arith.mulf %12, %13 : vector<8x1xf32>
    %15 = arith.mulf %0, %0 : vector<8x24xf32>
    %cst_22 = arith.constant dense<0.000000e+00> : vector<8xf32>
    %16 = vector.multi_reduction <add>, %15, %cst_22 [1] : vector<8x24xf32> to vector<8xf32>
    %17 = vector.shape_cast %16 : vector<8xf32> to vector<8x1xf32>
    %cst_23 = arith.constant 0.0416666679 : f32
    %18 = vector.broadcast %cst_23 : f32 to vector<8x1xf32>
    %19 = arith.mulf %17, %18 : vector<8x1xf32>
    %20 = arith.mulf %14, %14 : vector<8x1xf32>
    %21 = arith.subf %19, %20 : vector<8x1xf32>
    %cst_24 = arith.constant 0.000000e+00 : f32
    %22 = vector.broadcast %cst_24 : f32 to vector<8x1xf32>
    %23 = arith.maximumf %21, %22 : vector<8x1xf32>
    %24 = vector.broadcast %14 : vector<8x1xf32> to vector<8x24xf32>
    %25 = arith.subf %0, %24 : vector<8x24xf32>
    %cst_25 = arith.constant 9.99999974E-6 : f32
    %26 = vector.broadcast %cst_25 : f32 to vector<8x1xf32>
    %27 = arith.addf %23, %26 : vector<8x1xf32>
    %28 = math.rsqrt %27 : vector<8x1xf32>
    %29 = vector.broadcast %28 : vector<8x1xf32> to vector<8x24xf32>
    %30 = arith.mulf %25, %29 : vector<8x24xf32>
    %31 = vector.broadcast %1 : vector<1x24xf32> to vector<8x24xf32>
    %32 = arith.mulf %30, %31 : vector<8x24xf32>
    %33 = vector.broadcast %2 : vector<1x24xf32> to vector<8x24xf32>
    %34 = arith.addf %32, %33 : vector<8x24xf32>
    %cst_26 = arith.constant dense<0.000000e+00> : vector<8x128xf32>
    %35 = tpu.matmul %34, %3, %cst_26 {dimension_numbers = #tpu.dot_dimension_numbers<[1], [0], [0], [1], [0, 0, 1, 1], [], []>} : vector<8x24xf32>, vector<24x128xf32>, vector<8x128xf32> -> vector<8x128xf32>
    %36 = vector.broadcast %4 : vector<1x128xf32> to vector<8x128xf32>
    %37 = arith.addf %35, %36 : vector<8x128xf32>
    %cst_27 = arith.constant 0.000000e+00 : f32
    %38 = vector.broadcast %cst_27 : f32 to vector<8x128xf32>
    %39 = arith.maximumf %37, %38 : vector<8x128xf32>
    %cst_28 = arith.constant dense<0.000000e+00> : vector<8xf32>
    %40 = vector.multi_reduction <add>, %39, %cst_28 [1] : vector<8x128xf32> to vector<8xf32>
    %41 = vector.shape_cast %40 : vector<8xf32> to vector<8x1xf32>
    %cst_29 = arith.constant 3.125000e-02 : f32
    %42 = vector.broadcast %cst_29 : f32 to vector<8x1xf32>
    %43 = arith.mulf %41, %42 : vector<8x1xf32>
    %44 = arith.mulf %39, %39 : vector<8x128xf32>
    %cst_30 = arith.constant dense<0.000000e+00> : vector<8xf32>
    %45 = vector.multi_reduction <add>, %44, %cst_30 [1] : vector<8x128xf32> to vector<8xf32>
    %46 = vector.shape_cast %45 : vector<8xf32> to vector<8x1xf32>
    %cst_31 = arith.constant 3.125000e-02 : f32
    %47 = vector.broadcast %cst_31 : f32 to vector<8x1xf32>
    %48 = arith.mulf %46, %47 : vector<8x1xf32>
    %49 = arith.mulf %43, %43 : vector<8x1xf32>
    %50 = arith.subf %48, %49 : vector<8x1xf32>
    %cst_32 = arith.constant 0.000000e+00 : f32
    %51 = vector.broadcast %cst_32 : f32 to vector<8x1xf32>
    %52 = arith.maximumf %50, %51 : vector<8x1xf32>
    %53 = vector.broadcast %43 : vector<8x1xf32> to vector<8x128xf32>
    %54 = arith.subf %39, %53 : vector<8x128xf32>
    %cst_33 = arith.constant 9.99999974E-6 : f32
    %55 = vector.broadcast %cst_33 : f32 to vector<8x1xf32>
    %56 = arith.addf %52, %55 : vector<8x1xf32>
    %57 = math.rsqrt %56 : vector<8x1xf32>
    %58 = vector.broadcast %57 : vector<8x1xf32> to vector<8x128xf32>
    %59 = arith.mulf %54, %58 : vector<8x128xf32>
    %60 = vector.broadcast %5 : vector<1x128xf32> to vector<8x128xf32>
    %61 = arith.mulf %59, %60 : vector<8x128xf32>
    %62 = vector.broadcast %6 : vector<1x128xf32> to vector<8x128xf32>
    %63 = arith.addf %61, %62 : vector<8x128xf32>
    %cst_34 = arith.constant dense<0.000000e+00> : vector<8x128xf32>
    %64 = tpu.matmul %63, %7, %cst_34 {dimension_numbers = #tpu.dot_dimension_numbers<[1], [0], [0], [1], [0, 0, 1, 1], [], []>} : vector<8x128xf32>, vector<128x128xf32>, vector<8x128xf32> -> vector<8x128xf32>
    %65 = vector.broadcast %8 : vector<1x128xf32> to vector<8x128xf32>
    %66 = arith.addf %64, %65 : vector<8x128xf32>
    %cst_35 = arith.constant 0.000000e+00 : f32
    %67 = vector.broadcast %cst_35 : f32 to vector<8x128xf32>
    %68 = arith.maximumf %66, %67 : vector<8x128xf32>
    %cst_36 = arith.constant dense<0.000000e+00> : vector<8xf32>
    %69 = vector.multi_reduction <add>, %68, %cst_36 [1] : vector<8x128xf32> to vector<8xf32>
    %70 = vector.shape_cast %69 : vector<8xf32> to vector<8x1xf32>
    %cst_37 = arith.constant 3.125000e-02 : f32
    %71 = vector.broadcast %cst_37 : f32 to vector<8x1xf32>
    %72 = arith.mulf %70, %71 : vector<8x1xf32>
    %73 = arith.mulf %68, %68 : vector<8x128xf32>
    %cst_38 = arith.constant dense<0.000000e+00> : vector<8xf32>
    %74 = vector.multi_reduction <add>, %73, %cst_38 [1] : vector<8x128xf32> to vector<8xf32>
    %75 = vector.shape_cast %74 : vector<8xf32> to vector<8x1xf32>
    %cst_39 = arith.constant 3.125000e-02 : f32
    %76 = vector.broadcast %cst_39 : f32 to vector<8x1xf32>
    %77 = arith.mulf %75, %76 : vector<8x1xf32>
    %78 = arith.mulf %72, %72 : vector<8x1xf32>
    %79 = arith.subf %77, %78 : vector<8x1xf32>
    %cst_40 = arith.constant 0.000000e+00 : f32
    %80 = vector.broadcast %cst_40 : f32 to vector<8x1xf32>
    %81 = arith.maximumf %79, %80 : vector<8x1xf32>
    %82 = vector.broadcast %72 : vector<8x1xf32> to vector<8x128xf32>
    %83 = arith.subf %68, %82 : vector<8x128xf32>
    %cst_41 = arith.constant 9.99999974E-6 : f32
    %84 = vector.broadcast %cst_41 : f32 to vector<8x1xf32>
    %85 = arith.addf %81, %84 : vector<8x1xf32>
    %86 = math.rsqrt %85 : vector<8x1xf32>
    %87 = vector.broadcast %86 : vector<8x1xf32> to vector<8x128xf32>
    %88 = arith.mulf %83, %87 : vector<8x128xf32>
    %89 = vector.broadcast %9 : vector<1x128xf32> to vector<8x128xf32>
    %90 = arith.mulf %88, %89 : vector<8x128xf32>
    %91 = vector.broadcast %10 : vector<1x128xf32> to vector<8x128xf32>
    %92 = arith.addf %90, %91 : vector<8x128xf32>
    %c0_42 = arith.constant 0 : index
    %c0_43 = arith.constant 0 : index
    %93 = vector.load %arg2[%c0_42, %c0_43] : memref<8x128xf32, #tpu.memory_space<vmem>>, vector<8x128xf32>
    %c0_44 = arith.constant 0 : index
    %c0_45 = arith.constant 0 : index
    %94 = vector.load %arg3[%c0_44, %c0_45] : memref<8x1xf32, #tpu.memory_space<vmem>>, vector<8x1xf32>
    %95 = vector.broadcast %94 : vector<8x1xf32> to vector<8x128xf32>
    %96 = arith.mulf %93, %95 : vector<8x128xf32>
    %c0_46 = arith.constant 0 : index
    %c0_47 = arith.constant 0 : index
    %97 = vector.load %arg14[%c0_46, %c0_47] : memref<128x128xf32, #tpu.memory_space<vmem>>, vector<128x128xf32>
    %cst_48 = arith.constant dense<0.000000e+00> : vector<8x128xf32>
    %98 = tpu.matmul %92, %97, %cst_48 {dimension_numbers = #tpu.dot_dimension_numbers<[1], [0], [0], [1], [0, 0, 1, 1], [], []>} : vector<8x128xf32>, vector<128x128xf32>, vector<8x128xf32> -> vector<8x128xf32>
    %c0_49 = arith.constant 0 : index
    %c0_50 = arith.constant 0 : index
    %99 = vector.load %arg15[%c0_49, %c0_50] : memref<128x128xf32, #tpu.memory_space<vmem>>, vector<128x128xf32>
    %cst_51 = arith.constant dense<0.000000e+00> : vector<8x128xf32>
    %100 = tpu.matmul %96, %99, %cst_51 {dimension_numbers = #tpu.dot_dimension_numbers<[1], [0], [0], [1], [0, 0, 1, 1], [], []>} : vector<8x128xf32>, vector<128x128xf32>, vector<8x128xf32> -> vector<8x128xf32>
    %101 = arith.addf %98, %100 : vector<8x128xf32>
    %c0_52 = arith.constant 0 : index
    %c0_53 = arith.constant 0 : index
    %102 = vector.load %arg16[%c0_52, %c0_53] : memref<1x128xf32, #tpu.memory_space<vmem>>, vector<1x128xf32>
    %103 = vector.broadcast %102 : vector<1x128xf32> to vector<8x128xf32>
    %104 = arith.addf %101, %103 : vector<8x128xf32>
    %105 = arith.negf %104 : vector<8x128xf32>
    %106 = math.exp %105 : vector<8x128xf32>
    %cst_54 = arith.constant 1.000000e+00 : f32
    %107 = vector.broadcast %cst_54 : f32 to vector<8x128xf32>
    %108 = arith.addf %107, %106 : vector<8x128xf32>
    %109 = arith.divf %107, %108 : vector<8x128xf32>
    %c0_55 = arith.constant 0 : index
    %c0_56 = arith.constant 0 : index
    %110 = vector.load %arg17[%c0_55, %c0_56] : memref<128x128xf32, #tpu.memory_space<vmem>>, vector<128x128xf32>
    %cst_57 = arith.constant dense<0.000000e+00> : vector<8x128xf32>
    %111 = tpu.matmul %92, %110, %cst_57 {dimension_numbers = #tpu.dot_dimension_numbers<[1], [0], [0], [1], [0, 0, 1, 1], [], []>} : vector<8x128xf32>, vector<128x128xf32>, vector<8x128xf32> -> vector<8x128xf32>
    %c0_58 = arith.constant 0 : index
    %c0_59 = arith.constant 0 : index
    %112 = vector.load %arg18[%c0_58, %c0_59] : memref<128x128xf32, #tpu.memory_space<vmem>>, vector<128x128xf32>
    %cst_60 = arith.constant dense<0.000000e+00> : vector<8x128xf32>
    %113 = tpu.matmul %96, %112, %cst_60 {dimension_numbers = #tpu.dot_dimension_numbers<[1], [0], [0], [1], [0, 0, 1, 1], [], []>} : vector<8x128xf32>, vector<128x128xf32>, vector<8x128xf32> -> vector<8x128xf32>
    %114 = arith.addf %111, %113 : vector<8x128xf32>
    %c0_61 = arith.constant 0 : index
    %c0_62 = arith.constant 0 : index
    %115 = vector.load %arg19[%c0_61, %c0_62] : memref<1x128xf32, #tpu.memory_space<vmem>>, vector<1x128xf32>
    %116 = vector.broadcast %115 : vector<1x128xf32> to vector<8x128xf32>
    %117 = arith.addf %114, %116 : vector<8x128xf32>
    %118 = arith.negf %117 : vector<8x128xf32>
    %119 = math.exp %118 : vector<8x128xf32>
    %cst_63 = arith.constant 1.000000e+00 : f32
    %120 = vector.broadcast %cst_63 : f32 to vector<8x128xf32>
    %121 = arith.addf %120, %119 : vector<8x128xf32>
    %122 = arith.divf %120, %121 : vector<8x128xf32>
    %c0_64 = arith.constant 0 : index
    %c0_65 = arith.constant 0 : index
    %123 = vector.load %arg20[%c0_64, %c0_65] : memref<128x128xf32, #tpu.memory_space<vmem>>, vector<128x128xf32>
    %cst_66 = arith.constant dense<0.000000e+00> : vector<8x128xf32>
    %124 = tpu.matmul %92, %123, %cst_66 {dimension_numbers = #tpu.dot_dimension_numbers<[1], [0], [0], [1], [0, 0, 1, 1], [], []>} : vector<8x128xf32>, vector<128x128xf32>, vector<8x128xf32> -> vector<8x128xf32>
    %c0_67 = arith.constant 0 : index
    %c0_68 = arith.constant 0 : index
    %125 = vector.load %arg21[%c0_67, %c0_68] : memref<1x128xf32, #tpu.memory_space<vmem>>, vector<1x128xf32>
    %126 = vector.broadcast %125 : vector<1x128xf32> to vector<8x128xf32>
    %127 = arith.addf %124, %126 : vector<8x128xf32>
    %c0_69 = arith.constant 0 : index
    %c0_70 = arith.constant 0 : index
    %128 = vector.load %arg22[%c0_69, %c0_70] : memref<128x128xf32, #tpu.memory_space<vmem>>, vector<128x128xf32>
    %cst_71 = arith.constant dense<0.000000e+00> : vector<8x128xf32>
    %129 = tpu.matmul %96, %128, %cst_71 {dimension_numbers = #tpu.dot_dimension_numbers<[1], [0], [0], [1], [0, 0, 1, 1], [], []>} : vector<8x128xf32>, vector<128x128xf32>, vector<8x128xf32> -> vector<8x128xf32>
    %c0_72 = arith.constant 0 : index
    %c0_73 = arith.constant 0 : index
    %130 = vector.load %arg23[%c0_72, %c0_73] : memref<1x128xf32, #tpu.memory_space<vmem>>, vector<1x128xf32>
    %131 = vector.broadcast %130 : vector<1x128xf32> to vector<8x128xf32>
    %132 = arith.addf %129, %131 : vector<8x128xf32>
    %133 = arith.mulf %109, %132 : vector<8x128xf32>
    %134 = arith.addf %127, %133 : vector<8x128xf32>
    %135 = math.tanh %134 : vector<8x128xf32>
    %cst_74 = arith.constant 1.000000e+00 : f32
    %136 = vector.broadcast %cst_74 : f32 to vector<8x128xf32>
    %137 = arith.subf %136, %122 : vector<8x128xf32>
    %138 = arith.mulf %137, %135 : vector<8x128xf32>
    %139 = arith.mulf %122, %96 : vector<8x128xf32>
    %140 = arith.addf %138, %139 : vector<8x128xf32>
    %c0_75 = arith.constant 0 : index
    %c0_76 = arith.constant 0 : index
    %141 = vector.load %arg29[%c0_75, %c0_76] : memref<8x128xf32, #tpu.memory_space<vmem>>, vector<8x128xf32>
    tpu.vector_store %arg29[%c0_75, %c0_76], %140 {strides = array<i32>} : memref<8x128xf32, #tpu.memory_space<vmem>>, vector<8x128xf32>,
    %c0_77 = arith.constant 0 : index
    %c0_78 = arith.constant 0 : index
    %142 = vector.load %arg24[%c0_77, %c0_78] : memref<1x128xf32, #tpu.memory_space<vmem>>, vector<1x128xf32>
    %c0_79 = arith.constant 0 : index
    %c0_80 = arith.constant 0 : index
    %143 = vector.load %arg25[%c0_79, %c0_80] : memref<1x128xf32, #tpu.memory_space<vmem>>, vector<1x128xf32>
    %cst_81 = arith.constant dense<0.000000e+00> : vector<8xf32>
    %144 = vector.multi_reduction <add>, %140, %cst_81 [1] : vector<8x128xf32> to vector<8xf32>
    %145 = vector.shape_cast %144 : vector<8xf32> to vector<8x1xf32>
    %cst_82 = arith.constant 3.125000e-02 : f32
    %146 = vector.broadcast %cst_82 : f32 to vector<8x1xf32>
    %147 = arith.mulf %145, %146 : vector<8x1xf32>
    %148 = arith.mulf %140, %140 : vector<8x128xf32>
    %cst_83 = arith.constant dense<0.000000e+00> : vector<8xf32>
    %149 = vector.multi_reduction <add>, %148, %cst_83 [1] : vector<8x128xf32> to vector<8xf32>
    %150 = vector.shape_cast %149 : vector<8xf32> to vector<8x1xf32>
    %cst_84 = arith.constant 3.125000e-02 : f32
    %151 = vector.broadcast %cst_84 : f32 to vector<8x1xf32>
    %152 = arith.mulf %150, %151 : vector<8x1xf32>
    %153 = arith.mulf %147, %147 : vector<8x1xf32>
    %154 = arith.subf %152, %153 : vector<8x1xf32>
    %cst_85 = arith.constant 0.000000e+00 : f32
    %155 = vector.broadcast %cst_85 : f32 to vector<8x1xf32>
    %156 = arith.maximumf %154, %155 : vector<8x1xf32>
    %157 = vector.broadcast %147 : vector<8x1xf32> to vector<8x128xf32>
    %158 = arith.subf %140, %157 : vector<8x128xf32>
    %cst_86 = arith.constant 9.99999974E-6 : f32
    %159 = vector.broadcast %cst_86 : f32 to vector<8x1xf32>
    %160 = arith.addf %156, %159 : vector<8x1xf32>
    %161 = math.rsqrt %160 : vector<8x1xf32>
    %162 = vector.broadcast %161 : vector<8x1xf32> to vector<8x128xf32>
    %163 = arith.mulf %158, %162 : vector<8x128xf32>
    %164 = vector.broadcast %142 : vector<1x128xf32> to vector<8x128xf32>
    %165 = arith.mulf %163, %164 : vector<8x128xf32>
    %166 = vector.broadcast %143 : vector<1x128xf32> to vector<8x128xf32>
    %167 = arith.addf %165, %166 : vector<8x128xf32>
    %c0_87 = arith.constant 0 : index
    %c0_88 = arith.constant 0 : index
    %168 = vector.load %arg26[%c0_87, %c0_88] : memref<1x128xf32, #tpu.memory_space<vmem>>, vector<1x128xf32>
    %169 = vector.broadcast %168 : vector<1x128xf32> to vector<8x128xf32>
    %170 = arith.mulf %167, %169 : vector<8x128xf32>
    %cst_89 = arith.constant dense<0.000000e+00> : vector<8xf32>
    %171 = vector.multi_reduction <add>, %170, %cst_89 [1] : vector<8x128xf32> to vector<8xf32>
    %172 = vector.shape_cast %171 : vector<8xf32> to vector<8x1xf32>
    %c0_90 = arith.constant 0 : index
    %c0_91 = arith.constant 0 : index
    %173 = vector.load %arg27[%c0_90, %c0_91] : memref<1x1xf32, #tpu.memory_space<vmem>>, vector<1x1xf32>
    %174 = vector.broadcast %173 : vector<1x1xf32> to vector<8x1xf32>
    %175 = arith.addf %172, %174 : vector<8x1xf32>
    %c0_92 = arith.constant 0 : index
    %c0_93 = arith.constant 0 : index
    %176 = vector.load %arg28[%c0_92, %c0_93] : memref<8x1xf32, #tpu.memory_space<vmem>>, vector<8x1xf32>
    tpu.vector_store %arg28[%c0_92, %c0_93], %175 {strides = array<i32>} : memref<8x1xf32, #tpu.memory_space<vmem>>, vector<8x1xf32>,
    return
  }
  func.func @transform_0(%arg0: i32) -> (i32, i32) {
    %c0_i32 = arith.constant 0 : i32
    %c0_i32_0 = arith.constant 0 : i32
    return %arg0, %c0_i32 : i32, i32
  }
  func.func @transform_1(%arg0: i32) -> (i32, i32) {
    %c0_i32 = arith.constant 0 : i32
    %c0_i32_0 = arith.constant 0 : i32
    return %arg0, %c0_i32 : i32, i32
  }
  func.func @transform_2(%arg0: i32) -> (i32, i32) {
    %c0_i32 = arith.constant 0 : i32
    %c0_i32_0 = arith.constant 0 : i32
    return %arg0, %c0_i32 : i32, i32
  }
  func.func @transform_3(%arg0: i32) -> (i32, i32) {
    %c0_i32 = arith.constant 0 : i32
    %c0_i32_0 = arith.constant 0 : i32
    %c0_i32_1 = arith.constant 0 : i32
    return %c0_i32, %c0_i32_0 : i32, i32
  }
  func.func @transform_4(%arg0: i32) -> (i32, i32) {
    %c0_i32 = arith.constant 0 : i32
    %c0_i32_0 = arith.constant 0 : i32
    %c0_i32_1 = arith.constant 0 : i32
    return %c0_i32, %c0_i32_0 : i32, i32
  }
  func.func @transform_5(%arg0: i32) -> (i32, i32) {
    %c0_i32 = arith.constant 0 : i32
    %c0_i32_0 = arith.constant 0 : i32
    %c0_i32_1 = arith.constant 0 : i32
    return %c0_i32, %c0_i32_0 : i32, i32
  }
  func.func @transform_6(%arg0: i32) -> (i32, i32) {
    %c0_i32 = arith.constant 0 : i32
    %c0_i32_0 = arith.constant 0 : i32
    %c0_i32_1 = arith.constant 0 : i32
    return %c0_i32, %c0_i32_0 : i32, i32
  }
  func.func @transform_7(%arg0: i32) -> (i32, i32) {
    %c0_i32 = arith.constant 0 : i32
    %c0_i32_0 = arith.constant 0 : i32
    %c0_i32_1 = arith.constant 0 : i32
    return %c0_i32, %c0_i32_0 : i32, i32
  }
  func.func @transform_8(%arg0: i32) -> (i32, i32) {
    %c0_i32 = arith.constant 0 : i32
    %c0_i32_0 = arith.constant 0 : i32
    %c0_i32_1 = arith.constant 0 : i32
    return %c0_i32, %c0_i32_0 : i32, i32
  }
  func.func @transform_9(%arg0: i32) -> (i32, i32) {
    %c0_i32 = arith.constant 0 : i32
    %c0_i32_0 = arith.constant 0 : i32
    %c0_i32_1 = arith.constant 0 : i32
    return %c0_i32, %c0_i32_0 : i32, i32
  }
  func.func @transform_10(%arg0: i32) -> (i32, i32) {
    %c0_i32 = arith.constant 0 : i32
    %c0_i32_0 = arith.constant 0 : i32
    %c0_i32_1 = arith.constant 0 : i32
    return %c0_i32, %c0_i32_0 : i32, i32
  }
  func.func @transform_11(%arg0: i32) -> (i32, i32) {
    %c0_i32 = arith.constant 0 : i32
    %c0_i32_0 = arith.constant 0 : i32
    %c0_i32_1 = arith.constant 0 : i32
    return %c0_i32, %c0_i32_0 : i32, i32
  }
  func.func @transform_12(%arg0: i32) -> (i32, i32) {
    %c0_i32 = arith.constant 0 : i32
    %c0_i32_0 = arith.constant 0 : i32
    %c0_i32_1 = arith.constant 0 : i32
    return %c0_i32, %c0_i32_0 : i32, i32
  }
  func.func @transform_13(%arg0: i32) -> (i32, i32) {
    %c0_i32 = arith.constant 0 : i32
    %c0_i32_0 = arith.constant 0 : i32
    %c0_i32_1 = arith.constant 0 : i32
    return %c0_i32, %c0_i32_0 : i32, i32
  }
  func.func @transform_14(%arg0: i32) -> (i32, i32) {
    %c0_i32 = arith.constant 0 : i32
    %c0_i32_0 = arith.constant 0 : i32
    %c0_i32_1 = arith.constant 0 : i32
    return %c0_i32, %c0_i32_0 : i32, i32
  }
  func.func @transform_15(%arg0: i32) -> (i32, i32) {
    %c0_i32 = arith.constant 0 : i32
    %c0_i32_0 = arith.constant 0 : i32
    %c0_i32_1 = arith.constant 0 : i32
    return %c0_i32, %c0_i32_0 : i32, i32
  }
  func.func @transform_16(%arg0: i32) -> (i32, i32) {
    %c0_i32 = arith.constant 0 : i32
    %c0_i32_0 = arith.constant 0 : i32
    %c0_i32_1 = arith.constant 0 : i32
    return %c0_i32, %c0_i32_0 : i32, i32
  }
  func.func @transform_17(%arg0: i32) -> (i32, i32) {
    %c0_i32 = arith.constant 0 : i32
    %c0_i32_0 = arith.constant 0 : i32
    %c0_i32_1 = arith.constant 0 : i32
    return %c0_i32, %c0_i32_0 : i32, i32
  }
  func.func @transform_18(%arg0: i32) -> (i32, i32) {
    %c0_i32 = arith.constant 0 : i32
    %c0_i32_0 = arith.constant 0 : i32
    %c0_i32_1 = arith.constant 0 : i32
    return %c0_i32, %c0_i32_0 : i32, i32
  }
  func.func @transform_19(%arg0: i32) -> (i32, i32) {
    %c0_i32 = arith.constant 0 : i32
    %c0_i32_0 = arith.constant 0 : i32
    %c0_i32_1 = arith.constant 0 : i32
    return %c0_i32, %c0_i32_0 : i32, i32
  }
  func.func @transform_20(%arg0: i32) -> (i32, i32) {
    %c0_i32 = arith.constant 0 : i32
    %c0_i32_0 = arith.constant 0 : i32
    %c0_i32_1 = arith.constant 0 : i32
    return %c0_i32, %c0_i32_0 : i32, i32
  }
  func.func @transform_21(%arg0: i32) -> (i32, i32) {
    %c0_i32 = arith.constant 0 : i32
    %c0_i32_0 = arith.constant 0 : i32
    %c0_i32_1 = arith.constant 0 : i32
    return %c0_i32, %c0_i32_0 : i32, i32
  }
  func.func @transform_22(%arg0: i32) -> (i32, i32) {
    %c0_i32 = arith.constant 0 : i32
    %c0_i32_0 = arith.constant 0 : i32
    %c0_i32_1 = arith.constant 0 : i32
    return %c0_i32, %c0_i32_0 : i32, i32
  }
  func.func @transform_23(%arg0: i32) -> (i32, i32) {
    %c0_i32 = arith.constant 0 : i32
    %c0_i32_0 = arith.constant 0 : i32
    %c0_i32_1 = arith.constant 0 : i32
    return %c0_i32, %c0_i32_0 : i32, i32
  }
  func.func @transform_24(%arg0: i32) -> (i32, i32) {
    %c0_i32 = arith.constant 0 : i32
    %c0_i32_0 = arith.constant 0 : i32
    %c0_i32_1 = arith.constant 0 : i32
    return %c0_i32, %c0_i32_0 : i32, i32
  }
  func.func @transform_25(%arg0: i32) -> (i32, i32) {
    %c0_i32 = arith.constant 0 : i32
    %c0_i32_0 = arith.constant 0 : i32
    %c0_i32_1 = arith.constant 0 : i32
    return %c0_i32, %c0_i32_0 : i32, i32
  }
  func.func @transform_26(%arg0: i32) -> (i32, i32) {
    %c0_i32 = arith.constant 0 : i32
    %c0_i32_0 = arith.constant 0 : i32
    %c0_i32_1 = arith.constant 0 : i32
    return %c0_i32, %c0_i32_0 : i32, i32
  }
  func.func @transform_27(%arg0: i32) -> (i32, i32) {
    %c0_i32 = arith.constant 0 : i32
    %c0_i32_0 = arith.constant 0 : i32
    return %arg0, %c0_i32 : i32, i32
  }
  func.func @transform_28(%arg0: i32) -> (i32, i32) {
    %c0_i32 = arith.constant 0 : i32
    %c0_i32_0 = arith.constant 0 : i32
    return %arg0, %c0_i32 : i32, i32
  }
}

</mosaic_0001>

<bundles_post_ra>
// kernel: tpu_custom_call.1
= control target key start
LH: loop header
LB: loop body
LE: loop exit
PB: predicated region body
PF: predicated region fallthrough
CT: control target
= control target key end

     0   :  { %s2421_s0 = inlined_call_operand.hbm [shape: f32[8,24], index: 0, kind: input, shape index: {}]   ;;  %s2422_s1 = inlined_call_operand.hbm [shape: f32[8,128], index: 1, kind: input, shape index: {}]   ;;  %s2423_s2 = inlined_call_operand.vmem [shape: f32[8,1], index: 2, kind: input, shape index: {}]   ;;  %s2424_s3 = inlined_call_operand.vmem [shape: f32[1,24], index: 3, kind: input, shape index: {}]   ;;  %s2425_s4 = inlined_call_operand.vmem [shape: f32[1,24], index: 4, kind: input, shape index: {}]   ;;  %s2426_s5 = inlined_call_operand.vmem [shape: f32[24,128], index: 5, kind: input, shape index: {}]   ;;  %s2427_s6 = inlined_call_operand.vmem [shape: f32[1,128], index: 6, kind: input, shape index: {}]   ;;  %s2428_s7 = inlined_call_operand.vmem [shape: f32[1,128], index: 7, kind: input, shape index: {}]   ;;  %s2429_s8 = inlined_call_operand.vmem [shape: f32[1,128], index: 8, kind: input, shape index: {}]   ;;  %s2430_s9 = inlined_call_operand.hbm [shape: f32[128,128], index: 9, kind: input, shape index: {}]   ;;  %s2431_s10 = inlined_call_operand.vmem [shape: f32[1,128], index: 10, kind: input, shape index: {}]   ;;  %s2432_s11 = inlined_call_operand.vmem [shape: f32[1,128], index: 11, kind: input, shape index: {}]   ;;  %s2433_s12 = inlined_call_operand.vmem [shape: f32[1,128], index: 12, kind: input, shape index: {}]   ;;  %s2434_s13 = inlined_call_operand.hbm [shape: f32[128,128], index: 13, kind: input, shape index: {}]   ;;  %s2435_s14 = inlined_call_operand.hbm [shape: f32[128,128], index: 14, kind: input, shape index: {}]   ;;  %s2436_s15 = inlined_call_operand.vmem [shape: f32[1,128], index: 15, kind: input, shape index: {}]   ;;  %s2437_s16 = inlined_call_operand.hbm [shape: f32[128,128], index: 16, kind: input, shape index: {}]   ;;  %s2438_s17 = inlined_call_operand.hbm [shape: f32[128,128], index: 17, kind: input, shape index: {}]   ;;  %s2439_s18 = inlined_call_operand.vmem [shape: f32[1,128], index: 18, kind: input, shape index: {}]   ;;  %s2440_s19 = inlined_call_operand.hbm [shape: f32[128,128], index: 19, kind: input, shape index: {}]   ;;  %s2441_s20 = inlined_call_operand.vmem [shape: f32[1,128], index: 20, kind: input, shape index: {}]   ;;  %s2442_s21 = inlined_call_operand.hbm [shape: f32[128,128], index: 21, kind: input, shape index: {}]   ;;  %s2443_s22 = inlined_call_operand.vmem [shape: f32[1,128], index: 22, kind: input, shape index: {}]   ;;  %s2444_s23 = inlined_call_operand.vmem [shape: f32[1,128], index: 23, kind: input, shape index: {}]   ;;  %s2445_s24 = inlined_call_operand.vmem [shape: f32[1,128], index: 24, kind: input, shape index: {}]   ;;  %s2446_s25 = inlined_call_operand.vmem [shape: f32[1,128], index: 25, kind: input, shape index: {}]   ;;  %s2447_s26 = inlined_call_operand.<no memory space> [shape: f32[1,1], index: 26, kind: input, shape index: {}]   ;;  %s2448_s27 = inlined_call_operand.vmem [shape: f32[8,1], index: 27, kind: output, shape index: {0}]   ;;  %s2449_s28 = inlined_call_operand.hbm [shape: f32[8,128], index: 28, kind: output, shape index: {1}]  }
   0x1   :  { %2454 = sst [smem:[#allocation25_spill]] %s2421_s0  ;;  %v34_v0 = vstv %s2447_s26 }
   0x2   :  { %2455 = sst [smem:[#allocation26_spill]] %s2422_s1  ;;  %35 = vst [vmem:[#allocation2] sm:$0x1] %v34_v0 }
   0x3   :  { %2456 = sst [smem:[#allocation27_spill]] %s2423_s2 }
   0x4   :  { %2457 = sst [smem:[#allocation28_spill]] %s2424_s3 }
   0x5   :  { %2458 = sst [smem:[#allocation29_spill]] %s2425_s4 }
   0x6   :  { %2459 = sst [smem:[#allocation30_spill]] %s2426_s5 }
   0x7   :  { %2460 = sst [smem:[#allocation31_spill]] %s2427_s6 }
   0x8   :  { %2461 = sst [smem:[#allocation32_spill]] %s2428_s7 }
   0x9   :  { %2462 = sst [smem:[#allocation33_spill]] %s2429_s8 }
   0xa   :  { %2463 = sst [smem:[#allocation34_spill]] %s2430_s9 }
   0xb   :  { %2464 = sst [smem:[#allocation35_spill]] %s2431_s10 }
   0xc   :  { %2465 = sst [smem:[#allocation36_spill]] %s2432_s11 }
   0xd   :  { %2466 = sst [smem:[#allocation37_spill]] %s2433_s12 }
   0xe   :  { %36 = vsyncpa [#allocation4], 0 }
   0xf   :  { %37 = vsyncpa [#allocation7], 0 }
  0x10   :  { %38 = vsyncpa [#allocation10], 0 }
  0x11   :  { %39 = vsyncpa [#allocation13], 0 }
  0x12   :  { %40 = vsyncpa [#allocation16], 0 }
  0x13   :  { %41 = vsyncpa [#allocation5], 0  ;;  %s1962_s9 = smov [#allocation6]   ;;  %s2467_s10 = sld [smem:[#allocation26_spill]] }
  0x14   :  { %s58_s30 = sshll.u32 %s1962_s9, 4  ;;  %s59_s30 = int_to_ptr.vmem [resolvable:$true] %s58_s30 }
  0x19   :  { %s1730_s0 = scalar_lea.hbm %s2467_s10, 128 }
  0x1a   :  { %p1731_p0 = scmp.ne.s32.totalorder %s2467_s10, %s1730_s0  ;;  %p1734_p1 = scmp.lt.u32.totalorder %s1730_s0, %s2467_s10 }
  0x1c   :  { %p1736_p2 = pnand %p1734_p1, %p1731_p0 }
  0x1e   :  { %1739 = shalt.err (!%p1736_p2)
}
  0x1f   :  { %s1740_s7 = scalar_lea.vmem %s59_s30, 128  ;;  %p1745_p4 = scmp.lt.s32.totalorder %s59_s30, %s59_s30 }
  0x20   :  { %p1741_p3 = scmp.ne.s32.totalorder %s59_s30, %s1740_s7  ;;  %p1746_p5 = scmp.lt.s32.totalorder %s1740_s7, %s1740_s7 }
  0x22   :  { %p1747_p6 = por %p1746_p5, %p1745_p4 }
  0x24   :  { %p1748_p7 = pnand %p1747_p6, %p1741_p3 }
  0x26   :  { %1751 = shalt.err (!%p1748_p7)
}
  0x27   :  { %61 = dma.hbm_to_vmem [thread:$0]  %s2467_s10, 128, %s59_s30, [#allocation7]  }
  0x28   :  { %s1963_s4 = smov [#allocation9]   ;;  %s1964_s5 = smov [#allocation12]  }
  0x29   :  { %s99_s8 = sshll.u32 %s1963_s4, 4  ;;  %s125_s9 = sshll.u32 %s1964_s5, 4  ;;  %s100_s8 = int_to_ptr.vmem [resolvable:$true] %s99_s8  ;;  %s126_s9 = int_to_ptr.vmem [resolvable:$true] %s125_s9 }
  0x2a   :  { %s1752_s0 = scalar_lea.hbm %s2434_s13, 2048 }
  0x2b   :  { %p1753_p8 = scmp.ne.s32.totalorder %s2434_s13, %s1752_s0  ;;  %p1756_p9 = scmp.lt.u32.totalorder %s1752_s0, %s2434_s13 }
  0x2d   :  { %p1758_p10 = pnand %p1756_p9, %p1753_p8 }
  0x2f   :  { %1761 = shalt.err (!%p1758_p10)
}
  0x30   :  { %s1762_s30 = scalar_lea.vmem %s100_s8, 2048  ;;  %p1767_p12 = scmp.lt.s32.totalorder %s100_s8, %s100_s8 }
  0x31   :  { %p1763_p11 = scmp.ne.s32.totalorder %s100_s8, %s1762_s30  ;;  %p1768_p13 = scmp.lt.s32.totalorder %s1762_s30, %s1762_s30 }
  0x33   :  { %p1769_p0 = por %p1768_p13, %p1767_p12 }
  0x35   :  { %p1770_p1 = pnand %p1769_p0, %p1763_p11 }
  0x37   :  { %1773 = shalt.err (!%p1770_p1)
}
  0x38   :  { %s1965_s10 = smov 128   ;;  %s1966_s7 = smov 8  }
  0x39   :  { %105 = dma.hbm_to_vmem [thread:$0]  %s2434_s13, 2048, %s100_s8, [#allocation10], %s1965_s10, %s1965_s10, %s1966_s7  }
  0x3a   :  { %s1774_s3 = scalar_lea.hbm %s2437_s16, 2048 }
  0x3b   :  { %p1775_p2 = scmp.ne.s32.totalorder %s2437_s16, %s1774_s3  ;;  %p1778_p3 = scmp.lt.u32.totalorder %s1774_s3, %s2437_s16 }
  0x3d   :  { %p1780_p4 = pnand %p1778_p3, %p1775_p2 }
  0x3f   :  { %1783 = shalt.err (!%p1780_p4)
}
  0x40   :  { %s1784_s2 = scalar_lea.vmem %s126_s9, 2048  ;;  %p1789_p6 = scmp.lt.s32.totalorder %s126_s9, %s126_s9 }
  0x41   :  { %p1785_p5 = scmp.ne.s32.totalorder %s126_s9, %s1784_s2  ;;  %p1790_p7 = scmp.lt.s32.totalorder %s1784_s2, %s1784_s2 }
  0x43   :  { %p1791_p8 = por %p1790_p7, %p1789_p6 }
  0x45   :  { %p1792_p9 = pnand %p1791_p8, %p1785_p5 }
  0x47   :  { %1795 = shalt.err (!%p1792_p9)
}
  0x48   :  { %131 = dma.hbm_to_vmem [thread:$0]  %s2437_s16, 2048, %s126_s9, [#allocation13], %s1965_s10, %s1965_s10, %s1966_s7  }
  0x49   :  { %s1967_s26 = smov [#allocation15]   ;;  %s1968_s12 = smov [#allocation3]  }
  0x4a   :  { %s151_s30 = sshll.u32 %s1967_s26, 4  ;;  %s48_s1 = sshll.u32 %s1968_s12, 4  ;;  %s152_s30 = int_to_ptr.vmem [resolvable:$true] %s151_s30  ;;  %s49_s1 = int_to_ptr.vmem [resolvable:$true] %s48_s1 }
  0x4b   :  { %s1796_s3 = scalar_lea.hbm %s2440_s19, 2048 }
  0x4c   :  { %p1797_p10 = scmp.ne.s32.totalorder %s2440_s19, %s1796_s3  ;;  %p1800_p11 = scmp.lt.u32.totalorder %s1796_s3, %s2440_s19 }
  0x4e   :  { %p1802_p12 = pnand %p1800_p11, %p1797_p10 }
  0x50   :  { %1805 = shalt.err (!%p1802_p12)
}
  0x51   :  { %s1806_s16 = scalar_lea.vmem %s152_s30, 2048  ;;  %p1811_p0 = scmp.lt.s32.totalorder %s152_s30, %s152_s30 }
  0x52   :  { %p1807_p13 = scmp.ne.s32.totalorder %s152_s30, %s1806_s16  ;;  %p1812_p1 = scmp.lt.s32.totalorder %s1806_s16, %s1806_s16 }
  0x54   :  { %p1813_p2 = por %p1812_p1, %p1811_p0 }
  0x56   :  { %p1814_p3 = pnand %p1813_p2, %p1807_p13 }
  0x58   :  { %1817 = shalt.err (!%p1814_p3)
}
  0x59   :  { %157 = dma.hbm_to_vmem [thread:$0]  %s2440_s19, 2048, %s152_s30, [#allocation16], %s1965_s10, %s1965_s10, %s1966_s7  }
  0x5a   :  { %s2468_s26 = sld [smem:[#allocation25_spill]] }
  0x60   :  { %s1818_s12 = scalar_lea.hbm %s2468_s26, 128 }
  0x61   :  { %p1819_p4 = scmp.ne.s32.totalorder %s2468_s26, %s1818_s12  ;;  %p1822_p5 = scmp.lt.u32.totalorder %s1818_s12, %s2468_s26 }
  0x63   :  { %p1824_p6 = pnand %p1822_p5, %p1819_p4 }
  0x65   :  { %1827 = shalt.err (!%p1824_p6)
}
  0x66   :  { %s1828_s0 = scalar_lea.vmem %s49_s1, 128  ;;  %p1833_p8 = scmp.lt.s32.totalorder %s49_s1, %s49_s1 }
  0x67   :  { %p1829_p7 = scmp.ne.s32.totalorder %s49_s1, %s1828_s0  ;;  %p1834_p9 = scmp.lt.s32.totalorder %s1828_s0, %s1828_s0 }
  0x69   :  { %p1835_p10 = por %p1834_p9, %p1833_p8 }
  0x6b   :  { %p1836_p11 = pnand %p1835_p10, %p1829_p7 }
  0x6d   :  { %1839 = shalt.err (!%p1836_p11)
}
  0x6e   :  { %51 = dma.hbm_to_vmem [thread:$0]  %s2468_s26, 128, %s49_s1, [#allocation4]  }
  0x6f   :  { %s1969_s11 = smov [#allocation8]   ;;  %s1970_s16 = smov [#allocation11]  }
  0x70   :  { %s81_s29 = sshll.u32 %s1969_s11, 4  ;;  %s111_s9 = sshll.u32 %s1970_s16, 4  ;;  %s82_s29 = int_to_ptr.vmem [resolvable:$true] %s81_s29  ;;  %s112_s9 = int_to_ptr.vmem [resolvable:$true] %s111_s9 }
  0x71   :  { %s2469_s8 = sld [smem:[#allocation34_spill]] }
  0x77   :  { %s1840_s12 = scalar_lea.hbm %s2469_s8, 2048 }
  0x78   :  { %p1841_p12 = scmp.ne.s32.totalorder %s2469_s8, %s1840_s12  ;;  %p1844_p13 = scmp.lt.u32.totalorder %s1840_s12, %s2469_s8 }
  0x7a   :  { %p1846_p0 = pnand %p1844_p13, %p1841_p12 }
  0x7c   :  { %1849 = shalt.err (!%p1846_p0)
}
  0x7d   :  { %s1850_s1 = scalar_lea.vmem %s82_s29, 2048  ;;  %p1855_p2 = scmp.lt.s32.totalorder %s82_s29, %s82_s29 }
  0x7e   :  { %p1851_p1 = scmp.ne.s32.totalorder %s82_s29, %s1850_s1  ;;  %p1856_p3 = scmp.lt.s32.totalorder %s1850_s1, %s1850_s1 }
  0x80   :  { %p1857_p4 = por %p1856_p3, %p1855_p2 }
  0x82   :  { %p1858_p5 = pnand %p1857_p4, %p1851_p1 }
  0x84   :  { %1861 = shalt.err (!%p1858_p5)
}
  0x85   :  { %87 = dma.hbm_to_vmem [thread:$0]  %s2469_s8, 2048, %s82_s29, [#allocation7], %s1965_s10, %s1965_s10, %s1966_s7  }
  0x86   :  { %s1862_s11 = scalar_lea.hbm %s2435_s14, 2048 }
  0x87   :  { %p1863_p6 = scmp.ne.s32.totalorder %s2435_s14, %s1862_s11  ;;  %p1866_p7 = scmp.lt.u32.totalorder %s1862_s11, %s2435_s14 }
  0x89   :  { %p1868_p8 = pnand %p1866_p7, %p1863_p6 }
  0x8b   :  { %1871 = shalt.err (!%p1868_p8)
}
  0x8c   :  { %s1872_s4 = scalar_lea.vmem %s112_s9, 2048  ;;  %p1877_p10 = scmp.lt.s32.totalorder %s112_s9, %s112_s9 }
  0x8d   :  { %p1873_p9 = scmp.ne.s32.totalorder %s112_s9, %s1872_s4  ;;  %p1878_p11 = scmp.lt.s32.totalorder %s1872_s4, %s1872_s4 }
  0x8f   :  { %p1879_p12 = por %p1878_p11, %p1877_p10 }
  0x91   :  { %p1880_p13 = pnand %p1879_p12, %p1873_p9 }
  0x93   :  { %1883 = shalt.err (!%p1880_p13)
}
  0x94   :  { %117 = dma.hbm_to_vmem [thread:$0]  %s2435_s14, 2048, %s112_s9, [#allocation10], %s1965_s10, %s1965_s10, %s1966_s7  }
  0x95   :  { %s1971_s5 = smov [#allocation14]   ;;  %s1972_s6 = smov [#allocation17]  }
  0x96   :  { %s137_s3 = sshll.u32 %s1971_s5, 4  ;;  %s165_s1 = sshll.u32 %s1972_s6, 4  ;;  %s138_s3 = int_to_ptr.vmem [resolvable:$true] %s137_s3  ;;  %s166_s1 = int_to_ptr.vmem [resolvable:$true] %s165_s1 }
  0x97   :  { %s1884_s19 = scalar_lea.hbm %s2438_s17, 2048 }
  0x98   :  { %p1885_p0 = scmp.ne.s32.totalorder %s2438_s17, %s1884_s19  ;;  %p1888_p1 = scmp.lt.u32.totalorder %s1884_s19, %s2438_s17 }
  0x9a   :  { %p1890_p2 = pnand %p1888_p1, %p1885_p0 }
  0x9c   :  { %1893 = shalt.err (!%p1890_p2)
}
  0x9d   :  { %s1894_s14 = scalar_lea.vmem %s138_s3, 2048  ;;  %p1899_p4 = scmp.lt.s32.totalorder %s138_s3, %s138_s3 }
  0x9e   :  { %p1895_p3 = scmp.ne.s32.totalorder %s138_s3, %s1894_s14  ;;  %p1900_p5 = scmp.lt.s32.totalorder %s1894_s14, %s1894_s14 }
  0xa0   :  { %p1901_p6 = por %p1900_p5, %p1899_p4 }
  0xa2   :  { %p1902_p7 = pnand %p1901_p6, %p1895_p3 }
  0xa4   :  { %1905 = shalt.err (!%p1902_p7)
}
  0xa5   :  { %143 = dma.hbm_to_vmem [thread:$0]  %s2438_s17, 2048, %s138_s3, [#allocation13], %s1965_s10, %s1965_s10, %s1966_s7  }
  0xa6   :  { %s1906_s29 = scalar_lea.hbm %s2442_s21, 2048 }
  0xa7   :  { %p1907_p8 = scmp.ne.s32.totalorder %s2442_s21, %s1906_s29  ;;  %p1910_p9 = scmp.lt.u32.totalorder %s1906_s29, %s2442_s21 }
  0xa9   :  { %p1912_p10 = pnand %p1910_p9, %p1907_p8 }
  0xab   :  { %1915 = shalt.err (!%p1912_p10)
}
  0xac   :  { %s1916_s0 = scalar_lea.vmem %s166_s1, 2048  ;;  %p1921_p12 = scmp.lt.s32.totalorder %s166_s1, %s166_s1 }
  0xad   :  { %p1917_p11 = scmp.ne.s32.totalorder %s166_s1, %s1916_s0  ;;  %p1922_p13 = scmp.lt.s32.totalorder %s1916_s0, %s1916_s0 }
  0xaf   :  { %p1923_p0 = por %p1922_p13, %p1921_p12 }
  0xb1   :  { %p1924_p1 = pnand %p1923_p0, %p1917_p11 }
  0xb3   :  { %1927 = shalt.err (!%p1924_p1)
}
  0xb4   :  { %171 = dma.hbm_to_vmem [thread:$0]  %s2442_s21, 2048, %s166_s1, [#allocation16], %s1965_s10, %s1965_s10, %s1966_s7  }
  0xb5   :  { %1950 = dma.done.wait [#allocation4], 128  }
  0xb6   :  { %1951 = vsyncadd [#allocation4], 4294967168 }
  0xb7   :  { %1952 = dma.done.wait [#allocation7], 2176  }
  0xb8   :  { %1953 = vsyncadd [#allocation7], 4294965120 }
  0xb9   :  { %1954 = dma.done.wait [#allocation10], 4096  }
  0xba   :  { %1955 = vsyncadd [#allocation10], 4294963200 }
  0xbb   :  { %1956 = dma.done.wait [#allocation13], 4096  }
  0xbc   :  { %1957 = vsyncadd [#allocation13], 4294963200 }
  0xbd   :  { %1958 = dma.done.wait [#allocation16], 4096  }
  0xbe   :  { %1959 = vsyncadd [#allocation16], 4294963200  ;;  %vm237_vm0 = vcmask 195584   ;;  %v209_v1 = vld [vmem:[#allocation3] sm:$0xff]  ;;  %s2470_s7 = sld [smem:[#allocation30_spill]]  ;;  %v1973_v7 = vmov 0.0|0.0  }
  0xbf   :  { %v238_v2 = vsel %vm237_vm0, %v209_v1, 0.0  ;;  %v242_v3 = vmul.f32 %v209_v1, %v209_v1  ;;  %1524 = vmatprep.subr.bf16.mxu0 %v1973_v7  ;;  %vm1974_vm1 = vmmov 0   ;;  %v1975_v9 = vmov 0.0   ;;  %1527 = vmatprep.subr.bf16.mxu1 %v1973_v7  ;;  %s2471_s14 = sld [smem:[#allocation28_spill]]  ;;  %s2472_s12 = sld [smem:[#allocation29_spill]]  ;;  %v218_v26 = vld [vmem:[#allocation8] sm:$0xff] }
  0xc0   :  { %239 = vadd.xlane.f32.xlu0 %v238_v2  ;;  %1276 = vmatprep.mubr.msk.f32.mxu0 %vm1974_vm1, %v1975_v9  ;;  %v219_v27 = vld [vmem:[#allocation8 + $0x8] sm:$0xff]  ;;  %s2473_s8 = sld [smem:[#allocation31_spill]]  ;;  %v220_v35 = vld [vmem:[#allocation8 + $0x10] sm:$0xff]  ;;  %v221_v36 = vld [vmem:[#allocation8 + $0x18] sm:$0xff]  ;;  %s2474_s26 = sld [smem:[#allocation32_spill]] }
  0xc1   :  { %v243_v4 = vsel %vm237_vm0, %v242_v3, 0.0  ;;  %1311 = vmatprep.mubr.msk.f32.mxu1 %vm1974_vm1, %v1975_v9  ;;  %v1528_v28 = vpack.c.bf16 %v219_v27, %v218_v26  ;;  %v1531_v37 = vpack.c.bf16 %v221_v36, %v220_v35  ;;  %v222_v38 = vld [vmem:[#allocation8 + $0x20] sm:$0xff]  ;;  %v223_v39 = vld [vmem:[#allocation8 + $0x28] sm:$0xff]  ;;  %v224_v41 = vld [vmem:[#allocation8 + $0x30] sm:$0xff]  ;;  %s2475_s3 = sld [smem:[#allocation33_spill]]  ;;  %s2477_s30 = sld [smem:[#allocation27_spill]] }
  0xc2   :  { %v1534_v40 = vpack.c.bf16 %v223_v39, %v222_v38  ;;  %v225_v42 = vld [vmem:[#allocation8 + $0x38] sm:$0xff]  ;;  %v226_v44 = vld [vmem:[#allocation8 + $0x40] sm:$0xff]  ;;  %v227_v45 = vld [vmem:[#allocation8 + $0x48] sm:$0xff]  ;;  %s2478_s2 = sld [smem:[#allocation36_spill]]  ;;  %s2479_s13 = sld [smem:[#allocation37_spill]] }
  0xc3   :  { %1529 = vmatpush3.bf16.msra.mxu1 %v1528_v28  ;;  %v1537_v43 = vpack.c.bf16 %v225_v42, %v224_v41  ;;  %v1540_v46 = vpack.c.bf16 %v227_v45, %v226_v44  ;;  %v228_v47 = vld [vmem:[#allocation8 + $0x50] sm:$0xff]  ;;  %v229_v48 = vld [vmem:[#allocation8 + $0x58] sm:$0xff]  ;;  %v230_v50 = vld [vmem:[#allocation8 + $0x60] sm:$0xff]  ;;  %s1977_s21 = smov [#allocation18]  }
  0xc4   :  { %244 = vadd.xlane.f32.xlu0 %v243_v4  ;;  %v212_v5 = vld [vmem:[%s2470_s7] sm:$0xff]  ;;  %v213_v6 = vld [vmem:[%s2470_s7 + $0x8] sm:$0xff]  ;;  %v214_v10 = vld [vmem:[%s2470_s7 + $0x10] sm:$0xff]  ;;  %1530 = vmatprep.subr.bf16.mxu1 %v1973_v7  ;;  %v1543_v49 = vpack.c.bf16 %v229_v48, %v228_v47  ;;  %s2476_s7 = sld [smem:[#allocation35_spill]]  ;;  %s1113_s10 = sshll.u32 %s1977_s21, 4  ;;  %s1114_s10 = int_to_ptr.vmem [resolvable:$true] %s1113_s10 }
  0xc5   :  { %v1525_v8 = vpack.c.bf16 %v213_v6, %v212_v5  ;;  %v1128_v21 = vld [vmem:[%s2471_s14] ss:$0 sm:$0xff]  ;;  %v232_v53 = vld [vmem:[#allocation8 + $0x70] sm:$0xff]  ;;  %v233_v54 = vld [vmem:[#allocation8 + $0x78] sm:$0xff]  ;;  %p1933_p3 = scmp.lt.s32.totalorder %s1114_s10, %s1114_s10 }
  0xc6   :  { %v1129_v23 = vld [vmem:[%s2472_s12] ss:$0 sm:$0xff]  ;;  %v1549_v55 = vpack.c.bf16 %v233_v54, %v232_v53  ;;  %v512_v26 = vld [vmem:[#allocation11 + $0x38] sm:$0xff]  ;;  %v513_v28 = vld [vmem:[#allocation11 + $0x40] sm:$0xff] }
  0xc7   :  { %1526 = vmatpush3.bf16.msra.mxu0 %v1525_v8  ;;  %v1130_v29 = vld [vmem:[%s2473_s8] ss:$0 sm:$0xff]  ;;  %1532 = vmatpush3.bf16.msra.mxu1 %v1531_v37  ;;  %v1976_v8 = vmov 0   ;;  %v520_v47 = vld [vmem:[#allocation11 + $0x78] sm:$0xff]  ;;  %v497_v53 = vld [vmem:[#allocation9 + $0x40] sm:$0xff] }
  0xc8   :  { %1274 = vmatprep.subr.mxu0 %v1975_v9  ;;  %1533 = vmatprep.subr.bf16.mxu1 %v1973_v7  ;;  %v231_v51 = vld [vmem:[#allocation8 + $0x68] sm:$0xff] }
  0xc9   :  { %v1546_v52 = vpack.c.bf16 %v231_v51, %v230_v50  ;;  %v1132_v2 = vld [vmem:[%s2474_s26] ss:$0 sm:$0xff]  ;;  %1711 = vset.pattern.permute.xlu0 %v1976_v8  ;;  %v496_v50 = vld [vmem:[#allocation9 + $0x38] sm:$0xff]  ;;  %v691_v8 = vld [vmem:[#allocation14] sm:$0xff] }
  0xca   :  { %v1133_v4 = vld [vmem:[%s2475_s3] ss:$0 sm:$0xff] }
  0xcb   :  { %1275 = vmatpush3.msra.mxu0 %v214_v10  ;;  %1535 = vmatpush3.bf16.msra.mxu1 %v1534_v40  ;;  %v505_v10 = vld [vmem:[#allocation11] sm:$0xff]  ;;  %v518_v41 = vld [vmem:[#allocation11 + $0x68] sm:$0xff] }
  0xcc   :  { %1551 = vmatprep.subr.bf16.mxu0 %v1973_v7  ;;  %1536 = vmatprep.subr.bf16.mxu1 %v1973_v7  ;;  %v517_v40 = vld [vmem:[#allocation11 + $0x60] sm:$0xff]  ;;  %v494_v44 = vld [vmem:[#allocation9 + $0x28] sm:$0xff] }
  0xcd   :  { %v1570_v42 = vpack.c.bf16 %v518_v41, %v517_v40  ;;  %v482_v51 = vld [vmem:[%s2477_s30] sm:$0xff] }
  0xce   :  { %v498_v54 = vld [vmem:[#allocation9 + $0x48] sm:$0xff]  ;;  %v677_v41 = vld [vmem:[#allocation12 + $0x10] sm:$0xff] }
  0xcf   :  { %1538 = vmatpush3.bf16.msra.mxu1 %v1537_v43  ;;  %v493_v43 = vld [vmem:[#allocation9 + $0x20] sm:$0xff] }
  0xd0   :  { %1539 = vmatprep.subr.bf16.mxu1 %v1973_v7  ;;  %v1582_v45 = vpack.c.bf16 %v494_v44, %v493_v43 }
  0xd3   :  { %1541 = vmatpush3.bf16.msra.mxu1 %v1540_v46  ;;  %v519_v46 = vld [vmem:[#allocation11 + $0x70] sm:$0xff] }
  0xd4   :  { %1542 = vmatprep.subr.bf16.mxu1 %v1973_v7  ;;  %v1573_v48 = vpack.c.bf16 %v520_v47, %v519_v46  ;;  %v704_v46 = vld [vmem:[#allocation14 + $0x68] sm:$0xff]  ;;  %v679_v47 = vld [vmem:[#allocation12 + $0x20] sm:$0xff] }
  0xd7   :  { %1544 = vmatpush3.bf16.msra.mxu1 %v1543_v49  ;;  %v495_v49 = vld [vmem:[#allocation9 + $0x30] sm:$0xff] }
  0xd8   :  { %1545 = vmatprep.subr.bf16.mxu1 %v1973_v7 }
  0xdb   :  { %1547 = vmatpush3.bf16.msra.mxu1 %v1546_v52  ;;  %v1585_v52 = vpack.c.bf16 %v496_v50, %v495_v49 }
  0xdc   :  { %1548 = vmatprep.subr.bf16.mxu1 %v1973_v7 }
  0xdf   :  { %1550 = vmatpush3.bf16.msra.mxu1 %v1549_v55  ;;  %v1588_v55 = vpack.c.bf16 %v498_v54, %v497_v53  ;;  %v681_v53 = vld [vmem:[#allocation12 + $0x30] sm:$0xff]  ;;  %v682_v54 = vld [vmem:[#allocation12 + $0x38] sm:$0xff] }
  0xe0   :  { %1575 = vmatprep.subr.bf16.mxu1 %v1973_v7 }
 0x14d   :  { %v240_v11 = vpop.xlane.xlu0 %239 }
 0x14e   :  { %v241_v12 = vmul.f32 0.041666668, %v240_v11  ;;  %v506_v11 = vld [vmem:[#allocation11 + $0x8] sm:$0xff] }
 0x150   :  { %v247_v14 = vmul.f32 %v241_v12, %v241_v12  ;;  %v250_v19 = vsub.f32 %v209_v1, %v241_v12  ;;  %v507_v12 = vld [vmem:[#allocation11 + $0x10] sm:$0xff] }
 0x151   :  { %v245_v13 = vpop.xlane.xlu0 %244 }
 0x152   :  { %v246_v15 = vmul.f32 0.041666668, %v245_v13  ;;  %v1552_v13 = vpack.c.bf16 %v506_v11, %v505_v10  ;;  %v692_v10 = vld [vmem:[#allocation14 + $0x8] sm:$0xff]  ;;  %v481_v11 = vld [vmem:[#allocation6] sm:$0xff] }
 0x154   :  { %v248_v16 = vsub.f32 %v246_v15, %v247_v14  ;;  %v508_v14 = vld [vmem:[#allocation11 + $0x18] sm:$0xff] }
 0x155   :  { %v1555_v15 = vpack.c.bf16 %v508_v14, %v507_v12  ;;  %v1600_v14 = vpack.c.bf16 %v692_v10, %v691_v8  ;;  %v687_v8 = vld [vmem:[#allocation12 + $0x60] sm:$0xff]  ;;  %v688_v10 = vld [vmem:[#allocation12 + $0x68] sm:$0xff] }
 0x156   :  { %v249_v17 = vmax.f32 %v248_v16, 0.0  ;;  %v489_v16 = vld [vmem:[#allocation9] sm:$0xff] }
 0x158   :  { %v251_v18 = vadd.f32 1e-05, %v249_v17  ;;  %v490_v17 = vld [vmem:[#allocation9 + $0x8] sm:$0xff] }
 0x15a   :  { %1712 = vrsqrt.f32 %v251_v18  ;;  %v509_v18 = vld [vmem:[#allocation11 + $0x20] sm:$0xff] }
 0x164   :  { %v1713_v20 = vpop.eup %1712 }
 0x165   :  { %v253_v22 = vmul.f32 %v1713_v20, %v250_v19  ;;  %v510_v19 = vld [vmem:[#allocation11 + $0x28] sm:$0xff]  ;;  %v1576_v20 = vpack.c.bf16 %v490_v17, %v489_v16  ;;  %v693_v17 = vld [vmem:[#allocation14 + $0x10] sm:$0xff] }
 0x167   :  { %v260_v24 = vmul.f32 %v1128_v21, %v253_v22  ;;  %v491_v21 = vld [vmem:[#allocation9 + $0x10] sm:$0xff]  ;;  %v492_v22 = vld [vmem:[#allocation9 + $0x18] sm:$0xff] }
 0x169   :  { %v267_v25 = vadd.f32 %v1129_v23, %v260_v24  ;;  %v1579_v23 = vpack.c.bf16 %v492_v22, %v491_v21  ;;  %v1558_v24 = vpack.c.bf16 %v510_v19, %v509_v18  ;;  %v694_v18 = vld [vmem:[#allocation14 + $0x18] sm:$0xff]  ;;  %v696_v21 = vld [vmem:[#allocation14 + $0x28] sm:$0xff] }
 0x16a   :  { %v1603_v19 = vpack.c.bf16 %v694_v18, %v693_v17  ;;  %v690_v17 = vld [vmem:[#allocation12 + $0x78] sm:$0xff] }
 0x16b   :  { %1277 = vmatmul.mubr.msk.f32.vlgmr.msra.gmra.mrb[0].mxu0 %vm237_vm0, %v267_v25  ;;  %v511_v25 = vld [vmem:[#allocation11 + $0x30] sm:$0xff] }
 0x16c   :  { %1346 = vmatprep.mubr.msk.f32.mxu0 %vm1974_vm1, %v1975_v9  ;;  %1553 = vmatpush3.bf16.msra.mxu0 %v1552_v13  ;;  %v1561_v27 = vpack.c.bf16 %v512_v26, %v511_v25 }
 0x16d   :  { %1554 = vmatprep.subr.bf16.mxu0 %v1973_v7 }
 0x170   :  { %1556 = vmatpush3.bf16.msra.mxu0 %v1555_v15 }
 0x171   :  { %1557 = vmatprep.subr.bf16.mxu0 %v1973_v7 }
 0x174   :  { %1559 = vmatpush3.bf16.msra.mxu0 %v1558_v24  ;;  %v698_v24 = vld [vmem:[#allocation14 + $0x38] sm:$0xff] }
 0x175   :  { %1560 = vmatprep.subr.bf16.mxu0 %v1973_v7 }
 0x178   :  { %1562 = vmatpush3.bf16.msra.mxu0 %v1561_v27 }
 0x179   :  { %1563 = vmatprep.subr.bf16.mxu0 %v1973_v7 }
 0x23e   :  { %v343_v30 = vpop.f32.mrb[0].mxu0 }
 0x23f   :  { %v344_v31 = vadd.f32 %v1130_v29, %v343_v30  ;;  %v1278_v32 = vpop.f32.mrb[1].mxu0  ;;  %v514_v29 = vld [vmem:[#allocation11 + $0x48] sm:$0xff] }
 0x240   :  { %v1564_v30 = vpack.c.bf16 %v514_v29, %v513_v28  ;;  %v516_v32 = vld [vmem:[#allocation11 + $0x58] sm:$0xff]  ;;  %v699_v28 = vld [vmem:[#allocation14 + $0x40] sm:$0xff]  ;;  %v700_v29 = vld [vmem:[#allocation14 + $0x48] sm:$0xff] }
 0x241   :  { %v347_v33 = vmax.f32 %v344_v31, 0.0  ;;  %v515_v31 = vld [vmem:[#allocation11 + $0x50] sm:$0xff] }
 0x242   :  { %1565 = vmatpush3.bf16.msra.mxu0 %v1564_v30  ;;  %v1135_v30 = vld [vmem:[%s2478_s2] ss:$0 sm:$0xff] }
 0x243   :  { %348 = vadd.xlane.f32.xlu1 %v347_v33  ;;  %v351_v34 = vmul.f32 %v347_v33, %v347_v33  ;;  %1566 = vmatprep.subr.bf16.mxu0 %v1973_v7 }
 0x247   :  { %352 = vadd.xlane.f32.xlu1 %v351_v34  ;;  %v1134_v34 = vld [vmem:[%s2476_s7] ss:$0 sm:$0xff]  ;;  %s1928_s7 = scalar_lea.vmem %s1114_s10, 128 }
 0x248   :  { %p1929_p2 = scmp.ne.s32.totalorder %s1114_s10, %s1928_s7  ;;  %p1934_p4 = scmp.lt.s32.totalorder %s1928_s7, %s1928_s7 }
 0x24a   :  { %p1935_p5 = por %p1934_p4, %p1933_p3 }
 0x24c   :  { %p1936_p6 = pnand %p1935_p5, %p1929_p2 }
 0x2d0   :  { %v349_v56 = vpop.xlane.xlu1 %348 }
 0x2d1   :  { %v350_v57 = vmul.f32 0.03125, %v349_v56  ;;  %v499_v56 = vld [vmem:[#allocation9 + $0x50] sm:$0xff] }
 0x2d3   :  { %v355_v59 = vmul.f32 %v350_v57, %v350_v57  ;;  %v358_v0 = vsub.f32 %v347_v33, %v350_v57  ;;  %v1567_v33 = vpack.c.bf16 %v516_v32, %v515_v31  ;;  %v500_v57 = vld [vmem:[#allocation9 + $0x58] sm:$0xff]  ;;  %v675_v32 = vld [vmem:[#allocation12] sm:$0xff] }
 0x2d4   :  { %v353_v58 = vpop.xlane.xlu1 %352 }
 0x2d5   :  { %v354_v60 = vmul.f32 0.03125, %v353_v58  ;;  %1568 = vmatpush3.bf16.msra.mxu0 %v1567_v33  ;;  %v1591_v58 = vpack.c.bf16 %v500_v57, %v499_v56  ;;  %v676_v33 = vld [vmem:[#allocation12 + $0x8] sm:$0xff]  ;;  %v1633_v56 = vpack.c.bf16 %v682_v54, %v681_v53  ;;  %v861_v57 = vld [vmem:[#allocation15] sm:$0xff]  ;;  %v968_v53 = vld [vmem:[#allocation17 + $0x70] sm:$0xff] }
 0x2d6   :  { %1569 = vmatprep.subr.bf16.mxu0 %v1973_v7  ;;  %v969_v54 = vld [vmem:[#allocation17 + $0x78] sm:$0xff] }
 0x2d7   :  { %v356_v61 = vsub.f32 %v354_v60, %v355_v59  ;;  %v501_v59 = vld [vmem:[#allocation9 + $0x60] sm:$0xff]  ;;  %v502_v60 = vld [vmem:[#allocation9 + $0x68] sm:$0xff] }
 0x2d9   :  { %v357_v62 = vmax.f32 %v356_v61, 0.0  ;;  %1571 = vmatpush3.bf16.msra.mxu0 %v1570_v42  ;;  %v1594_v61 = vpack.c.bf16 %v502_v60, %v501_v59  ;;  %v678_v42 = vld [vmem:[#allocation12 + $0x18] sm:$0xff]  ;;  %v683_v59 = vld [vmem:[#allocation12 + $0x40] sm:$0xff]  ;;  %v684_v60 = vld [vmem:[#allocation12 + $0x48] sm:$0xff] }
 0x2da   :  { %1572 = vmatprep.subr.bf16.mxu0 %v1973_v7  ;;  %v1627_v44 = vpack.c.bf16 %v678_v42, %v677_v41  ;;  %v960_v41 = vld [vmem:[#allocation17 + $0x30] sm:$0xff]  ;;  %v961_v42 = vld [vmem:[#allocation17 + $0x38] sm:$0xff] }
 0x2db   :  { %v359_v63 = vadd.f32 1e-05, %v357_v62  ;;  %v503_v62 = vld [vmem:[#allocation9 + $0x70] sm:$0xff] }
 0x2dd   :  { %1714 = vrsqrt.f32 %v359_v63  ;;  %1574 = vmatpush3.bf16.msra.mxu0 %v1573_v48  ;;  %v504_v63 = vld [vmem:[#allocation9 + $0x78] sm:$0xff]  ;;  %v680_v48 = vld [vmem:[#allocation12 + $0x28] sm:$0xff] }
 0x2de   :  { %1599 = vmatprep.subr.bf16.mxu0 %v1973_v7  ;;  %v1630_v50 = vpack.c.bf16 %v680_v48, %v679_v47  ;;  %v964_v47 = vld [vmem:[#allocation17 + $0x50] sm:$0xff]  ;;  %v965_v48 = vld [vmem:[#allocation17 + $0x58] sm:$0xff] }
 0x2e7   :  { %v1715_v1 = vpop.eup %1714 }
 0x2e8   :  { %v361_v3 = vmul.f32 %v1715_v1, %v358_v0  ;;  %v1597_v0 = vpack.c.bf16 %v504_v63, %v503_v62  ;;  %v1636_v62 = vpack.c.bf16 %v684_v60, %v683_v59  ;;  %v863_v63 = vld [vmem:[#allocation15 + $0x10] sm:$0xff] }
 0x2ea   :  { %v368_v5 = vmul.f32 %v1132_v2, %v361_v3 }
 0x2ec   :  { %v375_v6 = vadd.f32 %v1133_v4, %v368_v5 }
 0x2ee   :  { %1312 = vmatmul.mubr.f32.vlgmr.msra.gmra.mrb[0].mxu1 %v375_v6 }
 0x2ef   :  { %1381 = vmatprep.mubr.msk.f32.mxu1 %vm1974_vm1, %v1975_v9  ;;  %1577 = vmatpush3.bf16.msra.mxu1 %v1576_v20  ;;  %v695_v20 = vld [vmem:[#allocation14 + $0x20] sm:$0xff] }
 0x2f0   :  { %1578 = vmatprep.subr.bf16.mxu1 %v1973_v7  ;;  %v1606_v22 = vpack.c.bf16 %v696_v21, %v695_v20  ;;  %v869_v20 = vld [vmem:[#allocation15 + $0x40] sm:$0xff]  ;;  %v870_v21 = vld [vmem:[#allocation15 + $0x48] sm:$0xff] }
 0x2f3   :  { %1580 = vmatpush3.bf16.msra.mxu1 %v1579_v23  ;;  %v697_v23 = vld [vmem:[#allocation14 + $0x30] sm:$0xff] }
 0x2f4   :  { %1581 = vmatprep.subr.bf16.mxu1 %v1973_v7  ;;  %v1609_v26 = vpack.c.bf16 %v698_v24, %v697_v23  ;;  %v955_v23 = vld [vmem:[#allocation17 + $0x8] sm:$0xff]  ;;  %v1660_v24 = vpack.c.bf16 %v870_v21, %v869_v20 }
 0x2f7   :  { %1583 = vmatpush3.bf16.msra.mxu1 %v1582_v45  ;;  %v703_v45 = vld [vmem:[#allocation14 + $0x60] sm:$0xff] }
 0x2f8   :  { %1584 = vmatprep.subr.bf16.mxu1 %v1973_v7  ;;  %v1618_v49 = vpack.c.bf16 %v704_v46, %v703_v45  ;;  %v963_v45 = vld [vmem:[#allocation17 + $0x48] sm:$0xff] }
 0x2fb   :  { %1586 = vmatpush3.bf16.msra.mxu1 %v1585_v52  ;;  %v706_v52 = vld [vmem:[#allocation14 + $0x78] sm:$0xff] }
 0x2fc   :  { %1587 = vmatprep.subr.bf16.mxu1 %v1973_v7 }
 0x2ff   :  { %1589 = vmatpush3.bf16.msra.mxu1 %v1588_v55 }
 0x300   :  { %1590 = vmatprep.subr.bf16.mxu1 %v1973_v7 }
 0x303   :  { %1592 = vmatpush3.bf16.msra.mxu1 %v1591_v58  ;;  %v862_v58 = vld [vmem:[#allocation15 + $0x8] sm:$0xff] }
 0x304   :  { %1593 = vmatprep.subr.bf16.mxu1 %v1973_v7 }
 0x307   :  { %1595 = vmatpush3.bf16.msra.mxu1 %v1594_v61  ;;  %v1648_v61 = vpack.c.bf16 %v862_v58, %v861_v57 }
 0x308   :  { %1596 = vmatprep.subr.bf16.mxu1 %v1973_v7 }
 0x30b   :  { %1598 = vmatpush3.bf16.msra.mxu1 %v1597_v0  ;;  %v864_v0 = vld [vmem:[#allocation15 + $0x18] sm:$0xff] }
 0x30c   :  { %1623 = vmatprep.subr.bf16.mxu1 %v1973_v7 }
 0x3c1   :  { %v448_v35 = vpop.f32.mrb[0].mxu1 }
 0x3c2   :  { %v449_v36 = vadd.f32 %v1134_v34, %v448_v35  ;;  %v1313_v37 = vpop.f32.mrb[1].mxu1  ;;  %v1136_v34 = vld [vmem:[%s2479_s13] ss:$0 sm:$0xff]  ;;  %v1612_v35 = vpack.c.bf16 %v700_v29, %v699_v28  ;;  %v956_v28 = vld [vmem:[#allocation17 + $0x10] sm:$0xff]  ;;  %v957_v29 = vld [vmem:[#allocation17 + $0x18] sm:$0xff] }
 0x3c3   :  { %v1624_v37 = vpack.c.bf16 %v676_v33, %v675_v32  ;;  %v873_v32 = vld [vmem:[#allocation15 + $0x60] sm:$0xff]  ;;  %v874_v33 = vld [vmem:[#allocation15 + $0x68] sm:$0xff] }
 0x3c4   :  { %v2313_v38 = vmax.f32 %v449_v36, 0.0 }
 0x3c6   :  { %453 = vadd.xlane.f32.xlu0 %v2313_v38  ;;  %v456_v39 = vmul.f32 %v2313_v38, %v2313_v38 }
 0x3c8   :  { %457 = vadd.xlane.f32.xlu1 %v456_v39  ;;  %v702_v39 = vld [vmem:[#allocation14 + $0x58] sm:$0xff] }
 0x3dc   :  { %485 = vperm.xlu0 %1711, %v482_v51   ;;  %v705_v51 = vld [vmem:[#allocation14 + $0x70] sm:$0xff] }
 0x3dd   :  { %v1621_v55 = vpack.c.bf16 %v706_v52, %v705_v51  ;;  %v967_v51 = vld [vmem:[#allocation17 + $0x68] sm:$0xff] }
 0x453   :  { %v454_v1 = vpop.xlane.xlu0 %453 }
 0x454   :  { %v455_v2 = vmul.f32 0.03125, %v454_v1  ;;  %v685_v1 = vld [vmem:[#allocation12 + $0x50] sm:$0xff] }
 0x455   :  { %v458_v3 = vpop.xlane.xlu1 %457 }
 0x456   :  { %v460_v4 = vmul.f32 %v455_v2, %v455_v2  ;;  %v459_v5 = vmul.f32 0.03125, %v458_v3  ;;  %v463_v25 = vsub.f32 %v2313_v38, %v455_v2  ;;  %v701_v38 = vld [vmem:[#allocation14 + $0x50] sm:$0xff]  ;;  %v686_v2 = vld [vmem:[#allocation12 + $0x58] sm:$0xff]  ;;  %v1651_v3 = vpack.c.bf16 %v864_v0, %v863_v63 }
 0x457   :  { %v1615_v43 = vpack.c.bf16 %v702_v39, %v701_v38  ;;  %v875_v38 = vld [vmem:[#allocation15 + $0x70] sm:$0xff]  ;;  %v876_v39 = vld [vmem:[#allocation15 + $0x78] sm:$0xff] }
 0x458   :  { %v461_v6 = vsub.f32 %v459_v5, %v460_v4  ;;  %v1639_v4 = vpack.c.bf16 %v686_v2, %v685_v1  ;;  %v865_v5 = vld [vmem:[#allocation15 + $0x20] sm:$0xff] }
 0x45a   :  { %v462_v12 = vmax.f32 %v461_v6, 0.0  ;;  %v866_v6 = vld [vmem:[#allocation15 + $0x28] sm:$0xff] }
 0x45b   :  { %v486_v13 = vpop.permute.xlu0 %485 }
 0x45c   :  { %v464_v15 = vadd.f32 1e-05, %v462_v12  ;;  %v2329_v16 = vmul.f32 %v486_v13, %v481_v11  ;;  %v1654_v11 = vpack.c.bf16 %v866_v6, %v865_v5  ;;  %v1642_v12 = vpack.c.bf16 %v688_v10, %v687_v8  ;;  %v867_v13 = vld [vmem:[#allocation15 + $0x30] sm:$0xff] }
 0x45e   :  { %1716 = vrsqrt.f32 %v464_v15  ;;  %1347 = vmatmul.mubr.f32.vlgmr.msra.gmra.mrb[2].mxu0 %v2329_v16  ;;  %v689_v15 = vld [vmem:[#allocation12 + $0x70] sm:$0xff] }
 0x45f   :  { %1601 = vmatpush3.bf16.msra.mxu0 %v1600_v14  ;;  %1416 = vmatprep.mubr.msk.f32.mxu0 %vm1974_vm1, %v1975_v9  ;;  %v868_v14 = vld [vmem:[#allocation15 + $0x38] sm:$0xff] }
 0x460   :  { %1602 = vmatprep.subr.bf16.mxu0 %v1973_v7  ;;  %v1657_v18 = vpack.c.bf16 %v868_v14, %v867_v13  ;;  %v1142_v13 = vld [vmem:[%s2443_s22] ss:$0 sm:$0xff] }
 0x463   :  { %1604 = vmatpush3.bf16.msra.mxu0 %v1603_v19  ;;  %v1645_v19 = vpack.c.bf16 %v690_v17, %v689_v15  ;;  %v1141_v15 = vld [vmem:[%s2441_s20] ss:$0 sm:$0xff] }
 0x464   :  { %1605 = vmatprep.subr.bf16.mxu0 %v1973_v7 }
 0x467   :  { %1607 = vmatpush3.bf16.msra.mxu0 %v1606_v22  ;;  %v954_v22 = vld [vmem:[#allocation17] sm:$0xff] }
 0x468   :  { %v1717_v27 = vpop.eup %1716  ;;  %1608 = vmatprep.subr.bf16.mxu0 %v1973_v7 }
 0x469   :  { %v466_v31 = vmul.f32 %v1717_v27, %v463_v25  ;;  %v1672_v25 = vpack.c.bf16 %v955_v23, %v954_v22  ;;  %v872_v27 = vld [vmem:[#allocation15 + $0x58] sm:$0xff] }
 0x46b   :  { %1610 = vmatpush3.bf16.msra.mxu0 %v1609_v26  ;;  %v473_v36 = vmul.f32 %v1135_v30, %v466_v31  ;;  %v871_v26 = vld [vmem:[#allocation15 + $0x50] sm:$0xff]  ;;  %v1675_v31 = vpack.c.bf16 %v957_v29, %v956_v28 }
 0x46c   :  { %1611 = vmatprep.subr.bf16.mxu0 %v1973_v7  ;;  %v1663_v30 = vpack.c.bf16 %v872_v27, %v871_v26 }
 0x46d   :  { %v2345_v40 = vadd.f32 %v1136_v34, %v473_v36  ;;  %v958_v34 = vld [vmem:[#allocation17 + $0x20] sm:$0xff]  ;;  %v1666_v36 = vpack.c.bf16 %v874_v33, %v873_v32 }
 0x46f   :  { %1613 = vmatpush3.bf16.msra.mxu0 %v1612_v35  ;;  %1382 = vmatmul.mubr.f32.vlgmr.msra.gmra.mrb[2].mxu1 %v2345_v40  ;;  %v959_v35 = vld [vmem:[#allocation17 + $0x28] sm:$0xff] }
 0x470   :  { %1625 = vmatpush3.bf16.msra.mxu1 %v1624_v37  ;;  %1614 = vmatprep.subr.bf16.mxu0 %v1973_v7  ;;  %v1678_v37 = vpack.c.bf16 %v959_v35, %v958_v34 }
 0x471   :  { %1626 = vmatprep.subr.bf16.mxu1 %v1973_v7  ;;  %1451 = vmatprep.mubr.msk.f32.mxu1 %vm1974_vm1, %v1975_v9 }
 0x473   :  { %1616 = vmatpush3.bf16.msra.mxu0 %v1615_v43  ;;  %v1669_v43 = vpack.c.bf16 %v876_v39, %v875_v38 }
 0x474   :  { %1628 = vmatpush3.bf16.msra.mxu1 %v1627_v44  ;;  %1617 = vmatprep.subr.bf16.mxu0 %v1973_v7  ;;  %v1681_v44 = vpack.c.bf16 %v961_v42, %v960_v41 }
 0x475   :  { %1629 = vmatprep.subr.bf16.mxu1 %v1973_v7 }
 0x477   :  { %1619 = vmatpush3.bf16.msra.mxu0 %v1618_v49  ;;  %v1687_v49 = vpack.c.bf16 %v965_v48, %v964_v47 }
 0x478   :  { %1631 = vmatpush3.bf16.msra.mxu1 %v1630_v50  ;;  %1620 = vmatprep.subr.bf16.mxu0 %v1973_v7  ;;  %v966_v50 = vld [vmem:[#allocation17 + $0x60] sm:$0xff] }
 0x479   :  { %1632 = vmatprep.subr.bf16.mxu1 %v1973_v7  ;;  %v1690_v52 = vpack.c.bf16 %v967_v51, %v966_v50 }
 0x47b   :  { %1622 = vmatpush3.bf16.msra.mxu0 %v1621_v55  ;;  %v1693_v55 = vpack.c.bf16 %v969_v54, %v968_v53 }
 0x47c   :  { %1634 = vmatpush3.bf16.msra.mxu1 %v1633_v56  ;;  %1647 = vmatprep.subr.bf16.mxu0 %v1973_v7 }
 0x47d   :  { %1635 = vmatprep.subr.bf16.mxu1 %v1973_v7 }
 0x47e   :  { %1417 = vmatmul.mubr.f32.vlgmr.msra.gmra.mrb[4].mxu0 %v2329_v16 }
 0x47f   :  { %1649 = vmatpush3.bf16.msra.mxu0 %v1648_v61  ;;  %1486 = vmatprep.mubr.msk.f32.mxu0 %vm1974_vm1, %v1975_v9 }
 0x480   :  { %1637 = vmatpush3.bf16.msra.mxu1 %v1636_v62  ;;  %1650 = vmatprep.subr.bf16.mxu0 %v1973_v7  ;;  %v1137_v62 = vld [vmem:[%s2436_s15] ss:$0 sm:$0xff] }
 0x481   :  { %1638 = vmatprep.subr.bf16.mxu1 %v1973_v7 }
 0x483   :  { %1652 = vmatpush3.bf16.msra.mxu0 %v1651_v3 }
 0x484   :  { %1640 = vmatpush3.bf16.msra.mxu1 %v1639_v4  ;;  %1653 = vmatprep.subr.bf16.mxu0 %v1973_v7 }
 0x485   :  { %1641 = vmatprep.subr.bf16.mxu1 %v1973_v7 }
 0x487   :  { %1655 = vmatpush3.bf16.msra.mxu0 %v1654_v11 }
 0x488   :  { %1643 = vmatpush3.bf16.msra.mxu1 %v1642_v12  ;;  %1656 = vmatprep.subr.bf16.mxu0 %v1973_v7 }
 0x489   :  { %1644 = vmatprep.subr.bf16.mxu1 %v1973_v7 }
 0x48b   :  { %1658 = vmatpush3.bf16.msra.mxu0 %v1657_v18 }
 0x48c   :  { %1646 = vmatpush3.bf16.msra.mxu1 %v1645_v19  ;;  %1659 = vmatprep.subr.bf16.mxu0 %v1973_v7 }
 0x48d   :  { %1671 = vmatprep.subr.bf16.mxu1 %v1973_v7 }
 0x48f   :  { %1452 = vmatmul.mubr.f32.vlgmr.msra.gmra.mrb[4].mxu1 %v2345_v40  ;;  %1661 = vmatpush3.bf16.msra.mxu0 %v1660_v24 }
 0x490   :  { %1673 = vmatpush3.bf16.msra.mxu1 %v1672_v25  ;;  %1662 = vmatprep.subr.bf16.mxu0 %v1973_v7 }
 0x491   :  { %1674 = vmatprep.subr.bf16.mxu1 %v1973_v7  ;;  %1521 = vmatprep.mubr.msk.f32.mxu1 %vm1974_vm1, %v1975_v9  ;;  %v962_v9 = vld [vmem:[#allocation17 + $0x40] sm:$0xff] }
 0x492   :  { %v1684_v46 = vpack.c.bf16 %v963_v45, %v962_v9  ;;  %v1145_v9 = vld [vmem:[%s2446_s25] ss:$0 sm:$0xff] }
 0x493   :  { %1664 = vmatpush3.bf16.msra.mxu0 %v1663_v30 }
 0x494   :  { %1676 = vmatpush3.bf16.msra.mxu1 %v1675_v31  ;;  %1665 = vmatprep.subr.bf16.mxu0 %v1973_v7 }
 0x495   :  { %1677 = vmatprep.subr.bf16.mxu1 %v1973_v7 }
 0x497   :  { %1667 = vmatpush3.bf16.msra.mxu0 %v1666_v36 }
 0x498   :  { %1679 = vmatpush3.bf16.msra.mxu1 %v1678_v37  ;;  %1668 = vmatprep.subr.bf16.mxu0 %v1973_v7 }
 0x499   :  { %1680 = vmatprep.subr.bf16.mxu1 %v1973_v7 }
 0x49b   :  { %1670 = vmatpush3.bf16.msra.mxu0 %v1669_v43  ;;  %v1144_v43 = vld [vmem:[%s2445_s24] ss:$0 sm:$0xff] }
 0x49c   :  { %1682 = vmatpush3.bf16.msra.mxu1 %v1681_v44 }
 0x49d   :  { %1683 = vmatprep.subr.bf16.mxu1 %v1973_v7 }
 0x49e   :  { %1487 = vmatmul.mubr.f32.vlgmr.msra.gmra.mrb[6].mxu0 %v2345_v40 }
 0x4a0   :  { %1685 = vmatpush3.bf16.msra.mxu1 %v1684_v46 }
 0x4a1   :  { %1686 = vmatprep.subr.bf16.mxu1 %v1973_v7 }
 0x4a4   :  { %1688 = vmatpush3.bf16.msra.mxu1 %v1687_v49 }
 0x4a5   :  { %1689 = vmatprep.subr.bf16.mxu1 %v1973_v7 }
 0x4a8   :  { %1691 = vmatpush3.bf16.msra.mxu1 %v1690_v52 }
 0x4a9   :  { %1692 = vmatprep.subr.bf16.mxu1 %v1973_v7  ;;  %v1139_v7 = vld [vmem:[%s2439_s18] ss:$0 sm:$0xff] }
 0x4ac   :  { %1694 = vmatpush3.bf16.msra.mxu1 %v1693_v55 }
 0x4af   :  { %1522 = vmatmul.mubr.f32.vlgmr.msra.gmra.mrb[6].mxu1 %v2329_v16 }
 0x531   :  { %v587_v40 = vpop.f32.mrb[2].mxu0 }
 0x532   :  { %v1348_v56 = vpop.f32.mrb[3].mxu0 }
 0x542   :  { %v657_v57 = vpop.f32.mrb[2].mxu1 }
 0x543   :  { %v658_v58 = vadd.f32 %v657_v57, %v587_v40  ;;  %v1383_v59 = vpop.f32.mrb[3].mxu1 }
 0x545   :  { %v668_v63 = vadd.f32 %v1137_v62, %v658_v58 }
 0x547   :  { %v1138_v3 = vmul.f32 -1.442695, %v668_v63 }
 0x549   :  { %1718 = vpow2.f32 %v1138_v3 }
 0x551   :  { %v773_v60 = vpop.f32.mrb[4].mxu0 }
 0x552   :  { %v1418_v61 = vpop.f32.mrb[5].mxu0 }
 0x553   :  { %v1719_v10 = vpop.eup %1718 }
 0x554   :  { %v672_v11 = vadd.f32 1.0, %v1719_v10 }
 0x562   :  { %v843_v0 = vpop.f32.mrb[4].mxu1 }
 0x563   :  { %v844_v1 = vadd.f32 %v843_v0, %v773_v60  ;;  %v1453_v2 = vpop.f32.mrb[5].mxu1 }
 0x565   :  { %v854_v4 = vadd.f32 %v1139_v7, %v844_v1 }
 0x567   :  { %v1140_v5 = vmul.f32 -1.442695, %v854_v4 }
 0x569   :  { %1720 = vpow2.f32 %v1140_v5 }
 0x56a   :  { %1722 = vrcp.f32 %v672_v11 }
 0x571   :  { %v950_v6 = vpop.f32.mrb[6].mxu0 }
 0x572   :  { %v1488_v8 = vpop.f32.mrb[7].mxu0  ;;  %v951_v21 = vadd.f32 %v1141_v15, %v950_v6 }
 0x573   :  { %v1721_v12 = vpop.eup %1720 }
 0x574   :  { %v858_v14 = vadd.f32 1.0, %v1721_v12  ;;  %v1723_v20 = vpop.eup %1722 }
 0x576   :  { %1724 = vrcp.f32 %v858_v14 }
 0x580   :  { %v1725_v24 = vpop.eup %1724 }
 0x581   :  { %v1050_v25 = vsub.f32 1.0, %v1725_v24  ;;  %v1052_v28 = vmul.f32 %v1725_v24, %v2329_v16  ;;  %v1143_v16 = vld [vmem:[%s2444_s23] ss:$0 sm:$0xff] }
 0x582   :  { %v1043_v17 = vpop.f32.mrb[6].mxu1 }
 0x583   :  { %v1044_v18 = vadd.f32 %v1142_v13, %v1043_v17  ;;  %v1523_v19 = vpop.f32.mrb[7].mxu1 }
 0x585   :  { %v1047_v22 = vmul.f32 %v1723_v20, %v1044_v18 }
 0x587   :  { %v1048_v23 = vadd.f32 %v1047_v22, %v951_v21 }
 0x589   :  { %1726 = vtanh.f32 %v1048_v23 }
 0x593   :  { %v1727_v26 = vpop.eup %1726 }
 0x594   :  { %v1051_v27 = vmul.f32 %v1727_v26, %v1050_v25 }
 0x596   :  { %v1053_v29 = vadd.f32 %v1052_v28, %v1051_v27 }
 0x598   :  { %1057 = vadd.xlane.f32.xlu1 %v1053_v29  ;;  %1054 = vst [vmem:[#allocation18] sm:$0xff] %v1053_v29  ;;  %v1060_v30 = vmul.f32 %v1053_v29, %v1053_v29 }
 0x59c   :  { %1061 = vadd.xlane.f32.xlu1 %v1060_v30 }
 0x625   :  { %v1058_v31 = vpop.xlane.xlu1 %1057 }
 0x626   :  { %v1059_v32 = vmul.f32 0.03125, %v1058_v31 }
 0x628   :  { %v1064_v34 = vmul.f32 %v1059_v32, %v1059_v32  ;;  %v1067_v39 = vsub.f32 %v1053_v29, %v1059_v32 }
 0x629   :  { %v1062_v33 = vpop.xlane.xlu1 %1061 }
 0x62a   :  { %v1063_v35 = vmul.f32 0.03125, %v1062_v33 }
 0x62c   :  { %v1065_v36 = vsub.f32 %v1063_v35, %v1064_v34 }
 0x62e   :  { %v1066_v37 = vmax.f32 %v1065_v36, 0.0 }
 0x630   :  { %v1068_v38 = vadd.f32 1e-05, %v1066_v37 }
 0x632   :  { %1728 = vrsqrt.f32 %v1068_v38 }
 0x63c   :  { %v1729_v41 = vpop.eup %1728 }
 0x63d   :  { %v1070_v42 = vmul.f32 %v1729_v41, %v1067_v39 }
 0x63f   :  { %v1077_v44 = vmul.f32 %v1143_v16, %v1070_v42 }
 0x641   :  { %v1084_v45 = vadd.f32 %v1144_v43, %v1077_v44 }
 0x643   :  { %v1092_v46 = vmul.f32 %v1145_v9, %v1084_v45 }
 0x645   :  { %1093 = vadd.xlane.f32.xlu1 %v1092_v46 }
 0x646   :  { %1939 = shalt.err (!%p1936_p6)
}
 0x647   :  { %s1940_s1 = scalar_lea.hbm %s2449_s28, 128 }
 0x648   :  { %p1941_p7 = scmp.ne.s32.totalorder %s2449_s28, %s1940_s1  ;;  %p1944_p8 = scmp.lt.u32.totalorder %s1940_s1, %s2449_s28 }
 0x64a   :  { %p1946_p9 = pnand %p1944_p8, %p1941_p7 }
 0x64c   :  { %1949 = shalt.err (!%p1946_p9)
}
 0x64d   :  { %1116 = dma.vmem_to_hbm [thread:$0]  %s1114_s10, 128, %s2449_s28, [#allocation5]   ;;  %v1146_v47 = vld [vmem:[#allocation2] ss:$0 sm:$0xff]  ;;  %vm1103_vm2 = vcmask 7168  }
 0x6d2   :  { %v1094_v48 = vpop.xlane.xlu1 %1093 }
 0x6d3   :  { %v1102_v49 = vadd.f32 %v1146_v47, %v1094_v48 }
 0x6d5   :  { %1104 = vst.msk [vmem:[%s2448_s27] sm:$0xff] %vm1103_vm2, %v1102_v49 }
 0x6d6   :  { %1960 = dma.done.wait [#allocation5], 128  }
 0x6d7   :  { %1961 = vsyncadd [#allocation5], 4294967168 }
 0x6d8   :  { %1122 = vsyncpa [#allocation4], 1 }
 0x6d9   :  { %1123 = vsyncpa [#allocation7], 1 }
 0x6da   :  { %1124 = vsyncpa [#allocation10], 1 }
 0x6db   :  { %1125 = vsyncpa [#allocation13], 1 }
 0x6dc   :  { %1126 = vsyncpa [#allocation16], 1 }
 0x6dd   :  { %1127 = vsyncpa [#allocation5], 1 }

</bundles_post_ra>
